<compile_context>
chip_gen: v5e
topology: v5e:2x2
jax: 0.10.0
libtpu: 0.0.40
codegen_flags: <defaults>
</compile_context>

<pallas_src>
import math

import jax
import jax.numpy as jnp
from jax.experimental import pallas as pl
from jax.experimental.pallas import tpu as pltpu

B, S, D = 2, 8, 32            # batch, seq, dialogue/emotion feature dim
E = S                          # num_emotions (must equal S, see above)
D_MODEL = 2 * D                # input_dim / transformer d_model
HIDDEN = D_MODEL               # hidden_dim == dim_feedforward (must equal d_model)
NUM_EMOTIONS = E
NUM_HEADS = 4
HEAD_DIM = D_MODEL // NUM_HEADS
LN_EPS = 1e-5

# Row offsets inside the packed "rest" buffer (shape (4*D_MODEL + 11, D_MODEL)).
R_WO, R_W1, R_W2, R_WC = 0, D_MODEL, 2 * D_MODEL, 3 * D_MODEL
_VEC0 = 4 * D_MODEL
(R_BQ, R_BK, R_BV, R_BO, R_B1, R_B2,
 R_G1, R_BE1, R_G2, R_BE2, R_BC) = range(_VEC0, _VEC0 + 11)
REST_ROWS = _VEC0 + 11


def _layer_norm(x, gamma, beta):
    mu = jnp.mean(x, axis=-1, keepdims=True)
    var = jnp.mean((x - mu) ** 2, axis=-1, keepdims=True)
    return (x - mu) * jax.lax.rsqrt(var + LN_EPS) * gamma + beta


def _gelu_exact(x):  # matches PyTorch activation='gelu' (erf form)
    return 0.5 * x * (1.0 + jax.lax.erf(x * 0.7071067811865476))


def emotion_classifier_kernel(dlg_ref, emo_ref, wqkv_ref, rest_ref, out_ref):
    f32 = jnp.float32

    def vrow(r):                                  # (1, D_MODEL) bias / gamma / beta row
        return rest_ref[pl.ds(r, 1), :]

    def wmat(r):                                  # (D_MODEL, D_MODEL) weight, (in, out) layout
        return rest_ref[pl.ds(r, D_MODEL), :]

    dlg = dlg_ref[...]                            # (B, S, D)
    emo = emo_ref[...]                            # (E, D)

    # ---- cross attention over emotion embeddings (softmax over E) ----
    dlg2d = dlg.reshape(B * S, D)                 # flatten (B,S) -> one matmul dim
    scores = jnp.einsum('nd,ed->ne', dlg2d, emo, preferred_element_type=f32)   # (B*S, E)
    scores = scores - jnp.max(scores, axis=-1, keepdims=True)
    pexp = jnp.exp(scores)
    attn_w = pexp * pl.reciprocal(jnp.sum(pexp, axis=-1, keepdims=True), approx=True)
    attn_w = attn_w.reshape(B, S, E)
    # attended[b, e, d] = sum_s attn_w[b, s, e] * emo[s, d]   (requires S == E)
    attended = jnp.einsum('bse,sd->bed', attn_w, emo, preferred_element_type=f32)

    x2d = jnp.concatenate([dlg2d, attended.reshape(B * S, D)], axis=-1)         # (B*S, d_model)

    # ---- fused QKV projection: one (16,64)@(64,192) MXU pass ----
    qkv = jnp.dot(x2d, wqkv_ref[...], preferred_element_type=f32)               # (B*S, 3*d_model)
    scale = HEAD_DIM ** -0.5
    q = (qkv[:, 0:D_MODEL] + vrow(R_BQ)) * scale
    k = qkv[:, D_MODEL:2 * D_MODEL] + vrow(R_BK)
    v = qkv[:, 2 * D_MODEL:3 * D_MODEL] + vrow(R_BV)
    q3 = q.reshape(B, S, D_MODEL)
    k3 = k.reshape(B, S, D_MODEL)
    v3 = v.reshape(B, S, D_MODEL)

    # ---- multi-head self-attention; output concat folded into the wo matmul ----
    wo = wmat(R_WO)                               # loaded once, sliced by rows per head
    attn2d = jnp.zeros((B * S, D_MODEL), f32)
    for h in range(NUM_HEADS):                    # static unroll (4 heads)
        sl = slice(h * HEAD_DIM, (h + 1) * HEAD_DIM)
        s = jnp.einsum('bqd,bkd->bqk', q3[..., sl], k3[..., sl],
                       preferred_element_type=f32)
        s = s - jnp.max(s, axis=-1, keepdims=True)
        es = jnp.exp(s)
        a = es * pl.reciprocal(jnp.sum(es, axis=-1, keepdims=True), approx=True)
        oh = jnp.einsum('bqk,bkd->bqd', a, v3[..., sl], preferred_element_type=f32)
        # head_out_h @ wo[h*HD:(h+1)*HD, :]  ==  concat(heads) @ wo
        attn2d = attn2d + jnp.dot(oh.reshape(B * S, HEAD_DIM), wo[sl, :],
                                  preferred_element_type=f32)
    attn2d = attn2d + vrow(R_BO)

    # ---- post-norm residual + FFN (exact-erf GELU), all as 16-row 2-D dots ----
    x1 = _layer_norm(x2d + attn2d, vrow(R_G1), vrow(R_BE1))
    hdn = jnp.dot(x1, wmat(R_W1), preferred_element_type=f32) + vrow(R_B1)
    hdn = _gelu_exact(hdn)
    ffn = jnp.dot(hdn, wmat(R_W2), preferred_element_type=f32) + vrow(R_B2)
    x2 = _layer_norm(x1 + ffn, vrow(R_G2), vrow(R_BE2))

    enc = jnp.mean(x2.reshape(B, S, D_MODEL), axis=1)        # mean over sequence -> (B, d_model)
    logits = jnp.dot(enc, wmat(R_WC), preferred_element_type=f32) + vrow(R_BC)  # (B, d_model), cols>=NE are 0
    out_ref[...] = logits[:, 0:NUM_EMOTIONS]


@jax.jit
def emotion_classifier(dlg, emo, w_qkv, w_rest):
    return pl.pallas_call(
        emotion_classifier_kernel,
        out_shape=jax.ShapeDtypeStruct((B, NUM_EMOTIONS), jnp.float32),
        in_specs=[pl.BlockSpec(memory_space=pltpu.MemorySpace.VMEM)] * 4,
        out_specs=pl.BlockSpec(memory_space=pltpu.MemorySpace.VMEM),
    )(dlg, emo, w_qkv, w_rest)


def init_params(key):
    """PyTorch-layout params: Linear weights are (out, in), biases/ln params (1, dim)."""
    ks = jax.random.split(key, 11)
    def w(k, shape, scale=0.05):
        return (scale * jax.random.normal(k, shape)).astype(jnp.float32)
    d, hdim, ne = D_MODEL, HIDDEN, NUM_EMOTIONS
    zeros = lambda s: jnp.zeros(s, jnp.float32)
    return dict(
        wq=w(ks[0], (d, d)), wk=w(ks[1], (d, d)), wv=w(ks[2], (d, d)),
        bq=w(ks[3], (1, d)), bk=w(ks[4], (1, d)), bv=w(ks[5], (1, d)),
        wo=w(ks[6], (d, d)), bo=zeros((1, d)),
        g1=jnp.ones((1, d), jnp.float32), be1=zeros((1, d)),
        g2=jnp.ones((1, d), jnp.float32), be2=zeros((1, d)),
        w1=w(ks[7], (hdim, d)), b1=w(ks[8], (1, hdim)),
        w2=w(ks[9], (d, hdim)), b2=zeros((1, d)),
        wc=w(ks[10], (ne, hdim)), bc=zeros((1, ne)),
    )


def pack_params(p):
    """Host-side packing: fused/pre-transposed QKV + one flat (in,out) weight/bias buffer."""
    t = jnp.transpose
    w_qkv = jnp.concatenate([t(p['wq']), t(p['wk']), t(p['wv'])], axis=1)       # (d, 3d)
    wc_pad = jnp.zeros((HIDDEN, D_MODEL), jnp.float32).at[:, :NUM_EMOTIONS].set(t(p['wc']))

    def vrow_pad(v):
        out = jnp.zeros((1, D_MODEL), jnp.float32)
        return out.at[:, : v.shape[-1]].set(v)

    rest = jnp.concatenate(
        [t(p['wo']), t(p['w1']), t(p['w2']), wc_pad,
         vrow_pad(p['bq']), vrow_pad(p['bk']), vrow_pad(p['bv']), vrow_pad(p['bo']),
         vrow_pad(p['b1']), vrow_pad(p['b2']),
         vrow_pad(p['g1']), vrow_pad(p['be1']), vrow_pad(p['g2']), vrow_pad(p['be2']),
         vrow_pad(p['bc'])],
        axis=0)                                                                  # (267, d)
    assert rest.shape == (REST_ROWS, D_MODEL)
    return w_qkv, rest


def reference(dlg, emo, p):
    """Pure-JAX mirror of the PyTorch forward (seq-first transformer layout)."""
    aw = jax.nn.softmax(jnp.einsum('bsd,ed->bse', dlg, emo), axis=-1)
    attended = jnp.einsum('bse,sd->bed', aw, emo)
    x = jnp.concatenate([dlg, attended], axis=-1)        # (B, S, d)
    x = jnp.transpose(x, (1, 0, 2))                      # (S, B, d) as in torch
    lin = lambda y, W, b: jnp.einsum('...i,oi->...o', y, W) + b[0]
    q, k, v = lin(x, p['wq'], p['bq']), lin(x, p['wk'], p['bk']), lin(x, p['wv'], p['bv'])
    split = lambda y: y.reshape(S, B, NUM_HEADS, HEAD_DIM)
    s = jnp.einsum('qbhd,kbhd->bhqk', split(q), split(k)) / math.sqrt(HEAD_DIM)
    a = jax.nn.softmax(s, axis=-1)
    o = jnp.einsum('bhqk,kbhd->qbhd', a, split(v)).reshape(S, B, D_MODEL)
    o = lin(o, p['wo'], p['bo'])
    def ln(y, g, b):
        mu = y.mean(-1, keepdims=True)
        var = ((y - mu) ** 2).mean(-1, keepdims=True)
        return (y - mu) / jnp.sqrt(var + LN_EPS) * g[0] + b[0]
    x1 = ln(x + o, p['g1'], p['be1'])
    h = lin(x1, p['w1'], p['b1'])
    h = 0.5 * h * (1.0 + jax.lax.erf(h / math.sqrt(2.0)))
    x2 = ln(x1 + lin(h, p['w2'], p['b2']), p['g2'], p['be2'])
    enc = x2.mean(axis=0)                                # mean over seq (torch dim=0)
    return lin(enc, p['wc'], p['bc'])


if __name__ == "__main__":
    key = jax.random.PRNGKey(0)
    k_dlg, k_emo, k_par = jax.random.split(key, 3)
    dlg = jax.random.normal(k_dlg, (B, S, D), jnp.float32)
    emo = jax.random.normal(k_emo, (E, D), jnp.float32)
    params = init_params(k_par)
    w_qkv, w_rest = pack_params(params)

    out = emotion_classifier(dlg, emo, w_qkv, w_rest)
    out = jax.block_until_ready(out)

    ref = reference(dlg, emo, params)
    assert out.shape == (B, NUM_EMOTIONS), out.shape
    # slightly relaxed tolerance: pl.reciprocal(approx=True) is used in both softmaxes
    assert jnp.allclose(out, ref, atol=2e-3, rtol=2e-3), (
        float(jnp.max(jnp.abs(out - ref))), out, ref)
    print("KERNEL_OK")
</pallas_src>

<mosaic_0001>
module attributes {stable_mosaic.version = 11 : i64} {
  func.func @emotion_classifier_kernel(%arg0: memref<2x8x32xf32, #tpu.memory_space<vmem>>, %arg1: memref<8x32xf32, #tpu.memory_space<vmem>>, %arg2: memref<64x192xf32, #tpu.memory_space<vmem>>, %arg3: memref<267x64xf32, #tpu.memory_space<vmem>>, %arg4: memref<2x8xf32, #tpu.memory_space<vmem>>) attributes {dimension_semantics = [], scalar_prefetch = 0 : i64, scratch_operands = 0 : i64, tpu.core_type = #tpu.core_type<tc>} {
    %c0 = arith.constant 0 : index
    %c0_0 = arith.constant 0 : index
    %c0_1 = arith.constant 0 : index
    %0 = vector.load %arg0[%c0, %c0_0, %c0_1] : memref<2x8x32xf32, #tpu.memory_space<vmem>>, vector<2x8x32xf32>
    %c0_2 = arith.constant 0 : index
    %c0_3 = arith.constant 0 : index
    %1 = vector.load %arg1[%c0_2, %c0_3] : memref<8x32xf32, #tpu.memory_space<vmem>>, vector<8x32xf32>
    %2 = vector.shape_cast %0 : vector<2x8x32xf32> to vector<16x32xf32>
    "tpu.trace_start"() <{level = 10 : i32, message = "nd,ed->ne"}> : () -> ()
    %cst = arith.constant dense<0.000000e+00> : vector<16x8xf32>
    %3 = tpu.matmul %2, %1, %cst {dimension_numbers = #tpu.dot_dimension_numbers<[1], [1], [0], [0], [0, 0, 1, 0], [], []>} : vector<16x32xf32>, vector<8x32xf32>, vector<16x8xf32> -> vector<16x8xf32>
    "tpu.trace_stop"() : () -> ()
    %cst_4 = arith.constant dense<0xFF800000> : vector<16xf32>
    %4 = vector.multi_reduction <maximumf>, %3, %cst_4 [1] : vector<16x8xf32> to vector<16xf32>
    %5 = vector.shape_cast %4 : vector<16xf32> to vector<16x1xf32>
    %6 = vector.broadcast %5 : vector<16x1xf32> to vector<16x8xf32>
    %7 = arith.subf %3, %6 : vector<16x8xf32>
    %8 = math.exp %7 : vector<16x8xf32>
    %cst_5 = arith.constant dense<0.000000e+00> : vector<16xf32>
    %9 = vector.multi_reduction <add>, %8, %cst_5 [1] : vector<16x8xf32> to vector<16xf32>
    %10 = vector.shape_cast %9 : vector<16xf32> to vector<16x1xf32>
    %11 = tpu.reciprocal %10 {approx = true} : vector<16x1xf32> -> vector<16x1xf32>
    %12 = vector.broadcast %11 : vector<16x1xf32> to vector<16x8xf32>
    %13 = arith.mulf %8, %12 : vector<16x8xf32>
    %14 = vector.shape_cast %13 : vector<16x8xf32> to vector<2x8x8xf32>
    "tpu.trace_start"() <{level = 10 : i32, message = "bse,sd->bed"}> : () -> ()
    %cst_6 = arith.constant dense<0.000000e+00> : vector<2x8x32xf32>
    %15 = tpu.matmul %14, %1, %cst_6 {dimension_numbers = #tpu.dot_dimension_numbers<[1], [0], [0, 2], [1], [0, 0, 0, 2, 1, 1], [], []>} : vector<2x8x8xf32>, vector<8x32xf32>, vector<2x8x32xf32> -> vector<2x8x32xf32>
    "tpu.trace_stop"() : () -> ()
    %16 = vector.shape_cast %15 : vector<2x8x32xf32> to vector<16x32xf32>
    %17 = tpu.concatenate %2, %16 in 1 : vector<16x32xf32>, vector<16x32xf32> -> vector<16x64xf32>
    %c0_7 = arith.constant 0 : index
    %c0_8 = arith.constant 0 : index
    %18 = vector.load %arg2[%c0_7, %c0_8] : memref<64x192xf32, #tpu.memory_space<vmem>>, vector<64x192xf32>
    %cst_9 = arith.constant dense<0.000000e+00> : vector<16x192xf32>
    %19 = tpu.matmul %17, %18, %cst_9 {dimension_numbers = #tpu.dot_dimension_numbers<[1], [0], [0], [1], [0, 0, 1, 1], [], []>} : vector<16x64xf32>, vector<64x192xf32>, vector<16x192xf32> -> vector<16x192xf32>
    %20 = vector.extract_strided_slice %19 {offsets = [0, 0], sizes = [16, 64], strides = [1, 1]} : vector<16x192xf32> to vector<16x64xf32>
    %c256 = arith.constant 256 : index
    %c0_10 = arith.constant 0 : index
    %21 = vector.load %arg3[%c256, %c0_10] : memref<267x64xf32, #tpu.memory_space<vmem>>, vector<1x64xf32>
    %22 = vector.broadcast %21 : vector<1x64xf32> to vector<16x64xf32>
    %23 = arith.addf %20, %22 : vector<16x64xf32>
    %cst_11 = arith.constant 2.500000e-01 : f32
    %24 = vector.broadcast %cst_11 : f32 to vector<16x64xf32>
    %25 = arith.mulf %23, %24 : vector<16x64xf32>
    %26 = vector.extract_strided_slice %19 {offsets = [0, 64], sizes = [16, 64], strides = [1, 1]} : vector<16x192xf32> to vector<16x64xf32>
    %c257 = arith.constant 257 : index
    %c0_12 = arith.constant 0 : index
    %27 = vector.load %arg3[%c257, %c0_12] : memref<267x64xf32, #tpu.memory_space<vmem>>, vector<1x64xf32>
    %28 = vector.broadcast %27 : vector<1x64xf32> to vector<16x64xf32>
    %29 = arith.addf %26, %28 : vector<16x64xf32>
    %30 = vector.extract_strided_slice %19 {offsets = [0, 128], sizes = [16, 64], strides = [1, 1]} : vector<16x192xf32> to vector<16x64xf32>
    %c258 = arith.constant 258 : index
    %c0_13 = arith.constant 0 : index
    %31 = vector.load %arg3[%c258, %c0_13] : memref<267x64xf32, #tpu.memory_space<vmem>>, vector<1x64xf32>
    %32 = vector.broadcast %31 : vector<1x64xf32> to vector<16x64xf32>
    %33 = arith.addf %30, %32 : vector<16x64xf32>
    %34 = vector.shape_cast %25 : vector<16x64xf32> to vector<2x8x64xf32>
    %35 = vector.shape_cast %29 : vector<16x64xf32> to vector<2x8x64xf32>
    %36 = vector.shape_cast %33 : vector<16x64xf32> to vector<2x8x64xf32>
    %c0_14 = arith.constant 0 : index
    %c0_15 = arith.constant 0 : index
    %37 = vector.load %arg3[%c0_14, %c0_15] : memref<267x64xf32, #tpu.memory_space<vmem>>, vector<64x64xf32>
    %cst_16 = arith.constant 0.000000e+00 : f32
    %38 = vector.broadcast %cst_16 : f32 to vector<16x64xf32>
    %39 = vector.extract_strided_slice %34 {offsets = [0, 0, 0], sizes = [2, 8, 16], strides = [1, 1, 1]} : vector<2x8x64xf32> to vector<2x8x16xf32>
    %40 = vector.extract_strided_slice %35 {offsets = [0, 0, 0], sizes = [2, 8, 16], strides = [1, 1, 1]} : vector<2x8x64xf32> to vector<2x8x16xf32>
    "tpu.trace_start"() <{level = 10 : i32, message = "bqd,bkd->bqk"}> : () -> ()
    %cst_17 = arith.constant dense<0.000000e+00> : vector<2x8x8xf32>
    %41 = tpu.matmul %39, %40, %cst_17 {dimension_numbers = #tpu.dot_dimension_numbers<[2], [2], [1], [1], [0, 0, 0, 1, 1, 1], [0], [0]>} : vector<2x8x16xf32>, vector<2x8x16xf32>, vector<2x8x8xf32> -> vector<2x8x8xf32>
    "tpu.trace_stop"() : () -> ()
    %cst_18 = arith.constant dense<0xFF800000> : vector<2x8xf32>
    %42 = vector.multi_reduction <maximumf>, %41, %cst_18 [2] : vector<2x8x8xf32> to vector<2x8xf32>
    %43 = vector.shape_cast %42 : vector<2x8xf32> to vector<2x8x1xf32>
    %44 = vector.broadcast %43 : vector<2x8x1xf32> to vector<2x8x8xf32>
    %45 = arith.subf %41, %44 : vector<2x8x8xf32>
    %46 = math.exp %45 : vector<2x8x8xf32>
    %cst_19 = arith.constant dense<0.000000e+00> : vector<2x8xf32>
    %47 = vector.multi_reduction <add>, %46, %cst_19 [2] : vector<2x8x8xf32> to vector<2x8xf32>
    %48 = vector.shape_cast %47 : vector<2x8xf32> to vector<2x8x1xf32>
    %49 = tpu.reciprocal %48 {approx = true} : vector<2x8x1xf32> -> vector<2x8x1xf32>
    %50 = vector.broadcast %49 : vector<2x8x1xf32> to vector<2x8x8xf32>
    %51 = arith.mulf %46, %50 : vector<2x8x8xf32>
    %52 = vector.extract_strided_slice %36 {offsets = [0, 0, 0], sizes = [2, 8, 16], strides = [1, 1, 1]} : vector<2x8x64xf32> to vector<2x8x16xf32>
    "tpu.trace_start"() <{level = 10 : i32, message = "bqk,bkd->bqd"}> : () -> ()
    %cst_20 = arith.constant dense<0.000000e+00> : vector<2x8x16xf32>
    %53 = tpu.matmul %51, %52, %cst_20 {dimension_numbers = #tpu.dot_dimension_numbers<[2], [1], [1], [2], [0, 0, 0, 1, 1, 2], [0], [0]>} : vector<2x8x8xf32>, vector<2x8x16xf32>, vector<2x8x16xf32> -> vector<2x8x16xf32>
    "tpu.trace_stop"() : () -> ()
    %54 = vector.shape_cast %53 : vector<2x8x16xf32> to vector<16x16xf32>
    %55 = vector.extract_strided_slice %37 {offsets = [0, 0], sizes = [16, 64], strides = [1, 1]} : vector<64x64xf32> to vector<16x64xf32>
    %cst_21 = arith.constant dense<0.000000e+00> : vector<16x64xf32>
    %56 = tpu.matmul %54, %55, %cst_21 {dimension_numbers = #tpu.dot_dimension_numbers<[1], [0], [0], [1], [0, 0, 1, 1], [], []>} : vector<16x16xf32>, vector<16x64xf32>, vector<16x64xf32> -> vector<16x64xf32>
    %57 = arith.addf %38, %56 : vector<16x64xf32>
    %58 = vector.extract_strided_slice %34 {offsets = [0, 0, 16], sizes = [2, 8, 16], strides = [1, 1, 1]} : vector<2x8x64xf32> to vector<2x8x16xf32>
    %59 = vector.extract_strided_slice %35 {offsets = [0, 0, 16], sizes = [2, 8, 16], strides = [1, 1, 1]} : vector<2x8x64xf32> to vector<2x8x16xf32>
    "tpu.trace_start"() <{level = 10 : i32, message = "bqd,bkd->bqk"}> : () -> ()
    %cst_22 = arith.constant dense<0.000000e+00> : vector<2x8x8xf32>
    %60 = tpu.matmul %58, %59, %cst_22 {dimension_numbers = #tpu.dot_dimension_numbers<[2], [2], [1], [1], [0, 0, 0, 1, 1, 1], [0], [0]>} : vector<2x8x16xf32>, vector<2x8x16xf32>, vector<2x8x8xf32> -> vector<2x8x8xf32>
    "tpu.trace_stop"() : () -> ()
    %cst_23 = arith.constant dense<0xFF800000> : vector<2x8xf32>
    %61 = vector.multi_reduction <maximumf>, %60, %cst_23 [2] : vector<2x8x8xf32> to vector<2x8xf32>
    %62 = vector.shape_cast %61 : vector<2x8xf32> to vector<2x8x1xf32>
    %63 = vector.broadcast %62 : vector<2x8x1xf32> to vector<2x8x8xf32>
    %64 = arith.subf %60, %63 : vector<2x8x8xf32>
    %65 = math.exp %64 : vector<2x8x8xf32>
    %cst_24 = arith.constant dense<0.000000e+00> : vector<2x8xf32>
    %66 = vector.multi_reduction <add>, %65, %cst_24 [2] : vector<2x8x8xf32> to vector<2x8xf32>
    %67 = vector.shape_cast %66 : vector<2x8xf32> to vector<2x8x1xf32>
    %68 = tpu.reciprocal %67 {approx = true} : vector<2x8x1xf32> -> vector<2x8x1xf32>
    %69 = vector.broadcast %68 : vector<2x8x1xf32> to vector<2x8x8xf32>
    %70 = arith.mulf %65, %69 : vector<2x8x8xf32>
    %71 = vector.extract_strided_slice %36 {offsets = [0, 0, 16], sizes = [2, 8, 16], strides = [1, 1, 1]} : vector<2x8x64xf32> to vector<2x8x16xf32>
    "tpu.trace_start"() <{level = 10 : i32, message = "bqk,bkd->bqd"}> : () -> ()
    %cst_25 = arith.constant dense<0.000000e+00> : vector<2x8x16xf32>
    %72 = tpu.matmul %70, %71, %cst_25 {dimension_numbers = #tpu.dot_dimension_numbers<[2], [1], [1], [2], [0, 0, 0, 1, 1, 2], [0], [0]>} : vector<2x8x8xf32>, vector<2x8x16xf32>, vector<2x8x16xf32> -> vector<2x8x16xf32>
    "tpu.trace_stop"() : () -> ()
    %73 = vector.shape_cast %72 : vector<2x8x16xf32> to vector<16x16xf32>
    %74 = vector.extract_strided_slice %37 {offsets = [16, 0], sizes = [16, 64], strides = [1, 1]} : vector<64x64xf32> to vector<16x64xf32>
    %cst_26 = arith.constant dense<0.000000e+00> : vector<16x64xf32>
    %75 = tpu.matmul %73, %74, %cst_26 {dimension_numbers = #tpu.dot_dimension_numbers<[1], [0], [0], [1], [0, 0, 1, 1], [], []>} : vector<16x16xf32>, vector<16x64xf32>, vector<16x64xf32> -> vector<16x64xf32>
    %76 = arith.addf %57, %75 : vector<16x64xf32>
    %77 = vector.extract_strided_slice %34 {offsets = [0, 0, 32], sizes = [2, 8, 16], strides = [1, 1, 1]} : vector<2x8x64xf32> to vector<2x8x16xf32>
    %78 = vector.extract_strided_slice %35 {offsets = [0, 0, 32], sizes = [2, 8, 16], strides = [1, 1, 1]} : vector<2x8x64xf32> to vector<2x8x16xf32>
    "tpu.trace_start"() <{level = 10 : i32, message = "bqd,bkd->bqk"}> : () -> ()
    %cst_27 = arith.constant dense<0.000000e+00> : vector<2x8x8xf32>
    %79 = tpu.matmul %77, %78, %cst_27 {dimension_numbers = #tpu.dot_dimension_numbers<[2], [2], [1], [1], [0, 0, 0, 1, 1, 1], [0], [0]>} : vector<2x8x16xf32>, vector<2x8x16xf32>, vector<2x8x8xf32> -> vector<2x8x8xf32>
    "tpu.trace_stop"() : () -> ()
    %cst_28 = arith.constant dense<0xFF800000> : vector<2x8xf32>
    %80 = vector.multi_reduction <maximumf>, %79, %cst_28 [2] : vector<2x8x8xf32> to vector<2x8xf32>
    %81 = vector.shape_cast %80 : vector<2x8xf32> to vector<2x8x1xf32>
    %82 = vector.broadcast %81 : vector<2x8x1xf32> to vector<2x8x8xf32>
    %83 = arith.subf %79, %82 : vector<2x8x8xf32>
    %84 = math.exp %83 : vector<2x8x8xf32>
    %cst_29 = arith.constant dense<0.000000e+00> : vector<2x8xf32>
    %85 = vector.multi_reduction <add>, %84, %cst_29 [2] : vector<2x8x8xf32> to vector<2x8xf32>
    %86 = vector.shape_cast %85 : vector<2x8xf32> to vector<2x8x1xf32>
    %87 = tpu.reciprocal %86 {approx = true} : vector<2x8x1xf32> -> vector<2x8x1xf32>
    %88 = vector.broadcast %87 : vector<2x8x1xf32> to vector<2x8x8xf32>
    %89 = arith.mulf %84, %88 : vector<2x8x8xf32>
    %90 = vector.extract_strided_slice %36 {offsets = [0, 0, 32], sizes = [2, 8, 16], strides = [1, 1, 1]} : vector<2x8x64xf32> to vector<2x8x16xf32>
    "tpu.trace_start"() <{level = 10 : i32, message = "bqk,bkd->bqd"}> : () -> ()
    %cst_30 = arith.constant dense<0.000000e+00> : vector<2x8x16xf32>
    %91 = tpu.matmul %89, %90, %cst_30 {dimension_numbers = #tpu.dot_dimension_numbers<[2], [1], [1], [2], [0, 0, 0, 1, 1, 2], [0], [0]>} : vector<2x8x8xf32>, vector<2x8x16xf32>, vector<2x8x16xf32> -> vector<2x8x16xf32>
    "tpu.trace_stop"() : () -> ()
    %92 = vector.shape_cast %91 : vector<2x8x16xf32> to vector<16x16xf32>
    %93 = vector.extract_strided_slice %37 {offsets = [32, 0], sizes = [16, 64], strides = [1, 1]} : vector<64x64xf32> to vector<16x64xf32>
    %cst_31 = arith.constant dense<0.000000e+00> : vector<16x64xf32>
    %94 = tpu.matmul %92, %93, %cst_31 {dimension_numbers = #tpu.dot_dimension_numbers<[1], [0], [0], [1], [0, 0, 1, 1], [], []>} : vector<16x16xf32>, vector<16x64xf32>, vector<16x64xf32> -> vector<16x64xf32>
    %95 = arith.addf %76, %94 : vector<16x64xf32>
    %96 = vector.extract_strided_slice %34 {offsets = [0, 0, 48], sizes = [2, 8, 16], strides = [1, 1, 1]} : vector<2x8x64xf32> to vector<2x8x16xf32>
    %97 = vector.extract_strided_slice %35 {offsets = [0, 0, 48], sizes = [2, 8, 16], strides = [1, 1, 1]} : vector<2x8x64xf32> to vector<2x8x16xf32>
    "tpu.trace_start"() <{level = 10 : i32, message = "bqd,bkd->bqk"}> : () -> ()
    %cst_32 = arith.constant dense<0.000000e+00> : vector<2x8x8xf32>
    %98 = tpu.matmul %96, %97, %cst_32 {dimension_numbers = #tpu.dot_dimension_numbers<[2], [2], [1], [1], [0, 0, 0, 1, 1, 1], [0], [0]>} : vector<2x8x16xf32>, vector<2x8x16xf32>, vector<2x8x8xf32> -> vector<2x8x8xf32>
    "tpu.trace_stop"() : () -> ()
    %cst_33 = arith.constant dense<0xFF800000> : vector<2x8xf32>
    %99 = vector.multi_reduction <maximumf>, %98, %cst_33 [2] : vector<2x8x8xf32> to vector<2x8xf32>
    %100 = vector.shape_cast %99 : vector<2x8xf32> to vector<2x8x1xf32>
    %101 = vector.broadcast %100 : vector<2x8x1xf32> to vector<2x8x8xf32>
    %102 = arith.subf %98, %101 : vector<2x8x8xf32>
    %103 = math.exp %102 : vector<2x8x8xf32>
    %cst_34 = arith.constant dense<0.000000e+00> : vector<2x8xf32>
    %104 = vector.multi_reduction <add>, %103, %cst_34 [2] : vector<2x8x8xf32> to vector<2x8xf32>
    %105 = vector.shape_cast %104 : vector<2x8xf32> to vector<2x8x1xf32>
    %106 = tpu.reciprocal %105 {approx = true} : vector<2x8x1xf32> -> vector<2x8x1xf32>
    %107 = vector.broadcast %106 : vector<2x8x1xf32> to vector<2x8x8xf32>
    %108 = arith.mulf %103, %107 : vector<2x8x8xf32>
    %109 = vector.extract_strided_slice %36 {offsets = [0, 0, 48], sizes = [2, 8, 16], strides = [1, 1, 1]} : vector<2x8x64xf32> to vector<2x8x16xf32>
    "tpu.trace_start"() <{level = 10 : i32, message = "bqk,bkd->bqd"}> : () -> ()
    %cst_35 = arith.constant dense<0.000000e+00> : vector<2x8x16xf32>
    %110 = tpu.matmul %108, %109, %cst_35 {dimension_numbers = #tpu.dot_dimension_numbers<[2], [1], [1], [2], [0, 0, 0, 1, 1, 2], [0], [0]>} : vector<2x8x8xf32>, vector<2x8x16xf32>, vector<2x8x16xf32> -> vector<2x8x16xf32>
    "tpu.trace_stop"() : () -> ()
    %111 = vector.shape_cast %110 : vector<2x8x16xf32> to vector<16x16xf32>
    %112 = vector.extract_strided_slice %37 {offsets = [48, 0], sizes = [16, 64], strides = [1, 1]} : vector<64x64xf32> to vector<16x64xf32>
    %cst_36 = arith.constant dense<0.000000e+00> : vector<16x64xf32>
    %113 = tpu.matmul %111, %112, %cst_36 {dimension_numbers = #tpu.dot_dimension_numbers<[1], [0], [0], [1], [0, 0, 1, 1], [], []>} : vector<16x16xf32>, vector<16x64xf32>, vector<16x64xf32> -> vector<16x64xf32>
    %114 = arith.addf %95, %113 : vector<16x64xf32>
    %c259 = arith.constant 259 : index
    %c0_37 = arith.constant 0 : index
    %115 = vector.load %arg3[%c259, %c0_37] : memref<267x64xf32, #tpu.memory_space<vmem>>, vector<1x64xf32>
    %116 = vector.broadcast %115 : vector<1x64xf32> to vector<16x64xf32>
    %117 = arith.addf %114, %116 : vector<16x64xf32>
    %118 = arith.addf %17, %117 : vector<16x64xf32>
    %c262 = arith.constant 262 : index
    %c0_38 = arith.constant 0 : index
    %119 = vector.load %arg3[%c262, %c0_38] : memref<267x64xf32, #tpu.memory_space<vmem>>, vector<1x64xf32>
    %c263 = arith.constant 263 : index
    %c0_39 = arith.constant 0 : index
    %120 = vector.load %arg3[%c263, %c0_39] : memref<267x64xf32, #tpu.memory_space<vmem>>, vector<1x64xf32>
    %cst_40 = arith.constant dense<0.000000e+00> : vector<16xf32>
    %121 = vector.multi_reduction <add>, %118, %cst_40 [1] : vector<16x64xf32> to vector<16xf32>
    %122 = vector.shape_cast %121 : vector<16xf32> to vector<16x1xf32>
    %cst_41 = arith.constant 6.400000e+01 : f32
    %123 = vector.broadcast %cst_41 : f32 to vector<16x1xf32>
    %124 = arith.divf %122, %123 : vector<16x1xf32>
    %125 = vector.broadcast %124 : vector<16x1xf32> to vector<16x64xf32>
    %126 = arith.subf %118, %125 : vector<16x64xf32>
    %127 = arith.mulf %126, %126 : vector<16x64xf32>
    %cst_42 = arith.constant dense<0.000000e+00> : vector<16xf32>
    %128 = vector.multi_reduction <add>, %127, %cst_42 [1] : vector<16x64xf32> to vector<16xf32>
    %129 = vector.shape_cast %128 : vector<16xf32> to vector<16x1xf32>
    %cst_43 = arith.constant 6.400000e+01 : f32
    %130 = vector.broadcast %cst_43 : f32 to vector<16x1xf32>
    %131 = arith.divf %129, %130 : vector<16x1xf32>
    %132 = vector.broadcast %124 : vector<16x1xf32> to vector<16x64xf32>
    %133 = arith.subf %118, %132 : vector<16x64xf32>
    %cst_44 = arith.constant 9.99999974E-6 : f32
    %134 = vector.broadcast %cst_44 : f32 to vector<16x1xf32>
    %135 = arith.addf %131, %134 : vector<16x1xf32>
    %136 = math.rsqrt %135 : vector<16x1xf32>
    %137 = vector.broadcast %136 : vector<16x1xf32> to vector<16x64xf32>
    %138 = arith.mulf %133, %137 : vector<16x64xf32>
    %139 = vector.broadcast %119 : vector<1x64xf32> to vector<16x64xf32>
    %140 = arith.mulf %138, %139 : vector<16x64xf32>
    %141 = vector.broadcast %120 : vector<1x64xf32> to vector<16x64xf32>
    %142 = arith.addf %140, %141 : vector<16x64xf32>
    %c64 = arith.constant 64 : index
    %c0_45 = arith.constant 0 : index
    %143 = vector.load %arg3[%c64, %c0_45] : memref<267x64xf32, #tpu.memory_space<vmem>>, vector<64x64xf32>
    %cst_46 = arith.constant dense<0.000000e+00> : vector<16x64xf32>
    %144 = tpu.matmul %142, %143, %cst_46 {dimension_numbers = #tpu.dot_dimension_numbers<[1], [0], [0], [1], [0, 0, 1, 1], [], []>} : vector<16x64xf32>, vector<64x64xf32>, vector<16x64xf32> -> vector<16x64xf32>
    %c260 = arith.constant 260 : index
    %c0_47 = arith.constant 0 : index
    %145 = vector.load %arg3[%c260, %c0_47] : memref<267x64xf32, #tpu.memory_space<vmem>>, vector<1x64xf32>
    %146 = vector.broadcast %145 : vector<1x64xf32> to vector<16x64xf32>
    %147 = arith.addf %144, %146 : vector<16x64xf32>
    %cst_48 = arith.constant 5.000000e-01 : f32
    %148 = vector.broadcast %cst_48 : f32 to vector<16x64xf32>
    %149 = arith.mulf %148, %147 : vector<16x64xf32>
    %cst_49 = arith.constant 0.707106769 : f32
    %150 = vector.broadcast %cst_49 : f32 to vector<16x64xf32>
    %151 = arith.mulf %147, %150 : vector<16x64xf32>
    %152 = math.erf %151 : vector<16x64xf32>
    %cst_50 = arith.constant 1.000000e+00 : f32
    %153 = vector.broadcast %cst_50 : f32 to vector<16x64xf32>
    %154 = arith.addf %153, %152 : vector<16x64xf32>
    %155 = arith.mulf %149, %154 : vector<16x64xf32>
    %c128 = arith.constant 128 : index
    %c0_51 = arith.constant 0 : index
    %156 = vector.load %arg3[%c128, %c0_51] : memref<267x64xf32, #tpu.memory_space<vmem>>, vector<64x64xf32>
    %cst_52 = arith.constant dense<0.000000e+00> : vector<16x64xf32>
    %157 = tpu.matmul %155, %156, %cst_52 {dimension_numbers = #tpu.dot_dimension_numbers<[1], [0], [0], [1], [0, 0, 1, 1], [], []>} : vector<16x64xf32>, vector<64x64xf32>, vector<16x64xf32> -> vector<16x64xf32>
    %c261 = arith.constant 261 : index
    %c0_53 = arith.constant 0 : index
    %158 = vector.load %arg3[%c261, %c0_53] : memref<267x64xf32, #tpu.memory_space<vmem>>, vector<1x64xf32>
    %159 = vector.broadcast %158 : vector<1x64xf32> to vector<16x64xf32>
    %160 = arith.addf %157, %159 : vector<16x64xf32>
    %161 = arith.addf %142, %160 : vector<16x64xf32>
    %c264 = arith.constant 264 : index
    %c0_54 = arith.constant 0 : index
    %162 = vector.load %arg3[%c264, %c0_54] : memref<267x64xf32, #tpu.memory_space<vmem>>, vector<1x64xf32>
    %c265 = arith.constant 265 : index
    %c0_55 = arith.constant 0 : index
    %163 = vector.load %arg3[%c265, %c0_55] : memref<267x64xf32, #tpu.memory_space<vmem>>, vector<1x64xf32>
    %cst_56 = arith.constant dense<0.000000e+00> : vector<16xf32>
    %164 = vector.multi_reduction <add>, %161, %cst_56 [1] : vector<16x64xf32> to vector<16xf32>
    %165 = vector.shape_cast %164 : vector<16xf32> to vector<16x1xf32>
    %cst_57 = arith.constant 6.400000e+01 : f32
    %166 = vector.broadcast %cst_57 : f32 to vector<16x1xf32>
    %167 = arith.divf %165, %166 : vector<16x1xf32>
    %168 = vector.broadcast %167 : vector<16x1xf32> to vector<16x64xf32>
    %169 = arith.subf %161, %168 : vector<16x64xf32>
    %170 = arith.mulf %169, %169 : vector<16x64xf32>
    %cst_58 = arith.constant dense<0.000000e+00> : vector<16xf32>
    %171 = vector.multi_reduction <add>, %170, %cst_58 [1] : vector<16x64xf32> to vector<16xf32>
    %172 = vector.shape_cast %171 : vector<16xf32> to vector<16x1xf32>
    %cst_59 = arith.constant 6.400000e+01 : f32
    %173 = vector.broadcast %cst_59 : f32 to vector<16x1xf32>
    %174 = arith.divf %172, %173 : vector<16x1xf32>
    %175 = vector.broadcast %167 : vector<16x1xf32> to vector<16x64xf32>
    %176 = arith.subf %161, %175 : vector<16x64xf32>
    %cst_60 = arith.constant 9.99999974E-6 : f32
    %177 = vector.broadcast %cst_60 : f32 to vector<16x1xf32>
    %178 = arith.addf %174, %177 : vector<16x1xf32>
    %179 = math.rsqrt %178 : vector<16x1xf32>
    %180 = vector.broadcast %179 : vector<16x1xf32> to vector<16x64xf32>
    %181 = arith.mulf %176, %180 : vector<16x64xf32>
    %182 = vector.broadcast %162 : vector<1x64xf32> to vector<16x64xf32>
    %183 = arith.mulf %181, %182 : vector<16x64xf32>
    %184 = vector.broadcast %163 : vector<1x64xf32> to vector<16x64xf32>
    %185 = arith.addf %183, %184 : vector<16x64xf32>
    %186 = vector.shape_cast %185 : vector<16x64xf32> to vector<2x8x64xf32>
    %cst_61 = arith.constant dense<0.000000e+00> : vector<2x64xf32>
    %187 = vector.multi_reduction <add>, %186, %cst_61 [1] : vector<2x8x64xf32> to vector<2x64xf32>
    %cst_62 = arith.constant 8.000000e+00 : f32
    %188 = vector.broadcast %cst_62 : f32 to vector<2x64xf32>
    %189 = arith.divf %187, %188 : vector<2x64xf32>
    %c192 = arith.constant 192 : index
    %c0_63 = arith.constant 0 : index
    %190 = vector.load %arg3[%c192, %c0_63] : memref<267x64xf32, #tpu.memory_space<vmem>>, vector<64x64xf32>
    %cst_64 = arith.constant dense<0.000000e+00> : vector<2x64xf32>
    %191 = tpu.matmul %189, %190, %cst_64 {dimension_numbers = #tpu.dot_dimension_numbers<[1], [0], [0], [1], [0, 0, 1, 1], [], []>} : vector<2x64xf32>, vector<64x64xf32>, vector<2x64xf32> -> vector<2x64xf32>
    %c266 = arith.constant 266 : index
    %c0_65 = arith.constant 0 : index
    %192 = vector.load %arg3[%c266, %c0_65] : memref<267x64xf32, #tpu.memory_space<vmem>>, vector<1x64xf32>
    %193 = vector.broadcast %192 : vector<1x64xf32> to vector<2x64xf32>
    %194 = arith.addf %191, %193 : vector<2x64xf32>
    %195 = vector.extract_strided_slice %194 {offsets = [0, 0], sizes = [2, 8], strides = [1, 1]} : vector<2x64xf32> to vector<2x8xf32>
    %c0_66 = arith.constant 0 : index
    %c0_67 = arith.constant 0 : index
    %196 = vector.load %arg4[%c0_66, %c0_67] : memref<2x8xf32, #tpu.memory_space<vmem>>, vector<2x8xf32>
    tpu.vector_store %arg4[%c0_66, %c0_67], %195 {strides = array<i32>} : memref<2x8xf32, #tpu.memory_space<vmem>>, vector<2x8xf32>,
    return
  }
}

</mosaic_0001>

<bundles_post_ra>
// kernel: emotion_classifier.1
= control target key start
LH: loop header
LB: loop body
LE: loop exit
PB: predicated region body
PF: predicated region fallthrough
CT: control target
= control target key end

     0   :  { %vm21_vm0 = vcmask 261120   ;;  %s1835_s0 = inlined_call_operand.vmem [shape: f32[2,8,32], index: 0, kind: input, shape index: {}]   ;;  %s1836_s1 = inlined_call_operand.vmem [shape: f32[8,32], index: 1, kind: input, shape index: {}]   ;;  %s1837_s2 = inlined_call_operand.vmem [shape: f32[64,192], index: 2, kind: input, shape index: {}]   ;;  %s1838_s3 = inlined_call_operand.vmem [shape: f32[267,64], index: 3, kind: input, shape index: {}]   ;;  %s1839_s4 = inlined_call_operand.hbm [shape: f32[2,8], index: 4, kind: output, shape index: {}]  }
   0x1   :  { %v20_v0 = vld [vmem:[%s1836_s1] sm:$0xff] }
   0x2   :  { %v1472_v1 = vld [vmem:[%s1835_s0] sm:$0xff]  ;;  %1274 = vmatpush.xpose.msk.msra.mxu0 %vm21_vm0, %v20_v0  ;;  %162 = vmatpush.msra.mxu1 %v20_v0 }
   0x5   :  { %1275 = vmatmul.msk.f32.vlgmr.msra.gmra.mxu0 %vm21_vm0, %v1472_v1 }
   0x6   :  { %9 = vsyncpa [#allocation3], 0  ;;  %vm54_vm1 = vcmask 64512   ;;  %v1481_v4 = vld [vmem:[%s1835_s0 + $0x8] sm:$0xff]  ;;  %s1431_s0 = smov 32   ;;  %v194_v22 = vld [vmem:[%s1837_s2 + $0x70] sm:$0xff] }
   0x7   :  { %v195_v23 = vld [vmem:[%s1837_s2 + $0x78] sm:$0xff]  ;;  %v192_v24 = vld [vmem:[%s1837_s2 + $0x60] sm:$0xff]  ;;  %211 = vmatpush.msra.mxu2 %v194_v22  ;;  %v193_v25 = vld [vmem:[%s1837_s2 + $0x68] sm:$0xff]  ;;  %vm196_vm2 = vcmask 523264   ;;  %s1432_s26 = smov 64   ;;  %s1433_s29 = smov 48  }
   0x8   :  { %234 = vmatpush.msra.mxu3 %v195_v23  ;;  %v190_v26 = vld [vmem:[%s1837_s2 + $0x50] sm:$0xff]  ;;  %v191_v27 = vld [vmem:[%s1837_s2 + $0x58] sm:$0xff]  ;;  %v188_v28 = vld [vmem:[%s1837_s2 + $0x40] sm:$0xff]  ;;  %s1434_s30 = smov 112   ;;  %vm278_vm3 = vcmask 130048   ;;  %s1435_s7 = smov 96  }
   0x9   :  { %212 = vmatpush.msra.mxu2 %v192_v24  ;;  %v189_v29 = vld [vmem:[%s1837_s2 + $0x48] sm:$0xff]  ;;  %v186_v30 = vld [vmem:[%s1837_s2 + $0x30] sm:$0xff]  ;;  %v187_v31 = vld [vmem:[%s1837_s2 + $0x38] sm:$0xff]  ;;  %s1436_s11 = smov 80   ;;  %s1437_s16 = smov 16  }
   0xa   :  { %235 = vmatpush.msra.mxu3 %v193_v25  ;;  %v184_v32 = vld [vmem:[%s1837_s2 + $0x20] sm:$0xff]  ;;  %v185_v33 = vld [vmem:[%s1837_s2 + $0x28] sm:$0xff]  ;;  %v182_v34 = vld [vmem:[%s1837_s2 + $0x10] sm:$0xff] }
   0xb   :  { %213 = vmatpush.msra.mxu2 %v190_v26  ;;  %v183_v35 = vld [vmem:[%s1837_s2 + $0x18] sm:$0xff]  ;;  %v180_v39 = vld [vmem:[%s1837_s2] sm:$0xff]  ;;  %v181_v40 = vld [vmem:[%s1837_s2 + $0x8] sm:$0xff] }
   0xc   :  { %236 = vmatpush.msra.mxu3 %v191_v27  ;;  %v1340_v45 = vld [vmem:[%s1838_s3 + $0x101] ss:$0 sm:$0xff]  ;;  %v1338_v50 = vld [vmem:[%s1838_s3 + $0x100] ss:$0 sm:$0xff]  ;;  %v1339_v57 = vld [vmem:[%s1838_s3 + $0x102] ss:$0 sm:$0xff] }
   0xd   :  { %1276 = vmatmul.msk.f32.gmra.mxu0 %vm21_vm0, %v1481_v4  ;;  %214 = vmatpush.msra.mxu2 %v188_v28 }
   0xe   :  { %237 = vmatpush.msra.mxu3 %v189_v29 }
   0xf   :  { %215 = vmatpush.msra.mxu2 %v186_v30 }
  0x10   :  { %238 = vmatpush.msra.mxu3 %v187_v31 }
  0x11   :  { %216 = vmatpush.msra.mxu2 %v184_v32 }
  0x12   :  { %239 = vmatpush.msra.mxu3 %v185_v33 }
  0x13   :  { %217 = vmatpush.msra.mxu2 %v182_v34 }
  0x14   :  { %240 = vmatpush.msra.mxu3 %v183_v35 }
  0x15   :  { %218 = vmatpush.msra.mxu2 %v180_v39  ;;  %v270_v39 = vld [vmem:[%s1838_s3 + $0x18] sm:$0xff] }
  0x16   :  { %241 = vmatpush.msra.mxu3 %v181_v40 }
  0x82   :  { %v48_v2 = vpop.f32.mrf.mxu0 }
  0x83   :  { %v55_v3 = vsel %vm54_vm1, %v48_v2, -inf }
  0x84   :  { %56 = vmax.xlane.f32.xlu0 %v55_v3 }
  0x8a   :  { %v51_v13 = vpop.f32.mrf.mxu0 }
  0x8b   :  { %v58_v14 = vsel %vm54_vm1, %v51_v13, -inf }
  0xf7   :  { %v57_v5 = vpop.xlane.xlu0 %56 }
  0xf8   :  { %v61_v6 = vsub.f32 %v48_v2, %v57_v5 }
  0xfa   :  { %v63_v7 = vmul.f32 1.442695, %v61_v6 }
  0xfc   :  { %1349 = vpow2.f32 %v63_v7 }
 0x102   :  { %v1350_v8 = vpop.eup %1349 }
 0x103   :  { %v67_v9 = vsel %vm54_vm1, %v1350_v8, 0.0 }
 0x104   :  { %68 = vadd.xlane.f32.xlu0 %v67_v9 }
 0x177   :  { %v69_v10 = vpop.xlane.xlu0 %68 }
 0x178   :  { %1351 = vrcp.f32 %v69_v10 }
 0x17e   :  { %v1352_v11 = vpop.eup %1351 }
 0x17f   :  { %v75_v12 = vmul.f32 %v1352_v11, %v1350_v8 }
 0x181   :  { %77 = vxpose.xlu1.b32.start.end [1/1] (short) (narrow) %v75_v12, 8 }
 0x1e1   :  { %59 = vmax.xlane.f32.xlu1 %v58_v14 }
 0x225   :  { %v93_v15 = vpop.trf.xlu1 }
 0x226   :  { %1277 = vmatmul.msk.f32.vlgmr.msra.gmra.mxu1 %vm54_vm1, %v93_v15 }
 0x254   :  { %v60_v16 = vpop.xlane.xlu1 %59 }
 0x255   :  { %v62_v17 = vsub.f32 %v51_v13, %v60_v16 }
 0x257   :  { %v65_v18 = vmul.f32 1.442695, %v62_v17 }
 0x259   :  { %1353 = vpow2.f32 %v65_v18 }
 0x25f   :  { %v1354_v19 = vpop.eup %1353 }
 0x260   :  { %v70_v20 = vsel %vm54_vm1, %v1354_v19, 0.0 }
 0x261   :  { %71 = vadd.xlane.f32.xlu2 %v70_v20 }
 0x2a3   :  { %v164_v21 = vpop.f32.mrf.mxu1 }
 0x2a4   :  { %172 = vrot.lane.b32.xlu0 %v164_v21, %s1431_s0 }
 0x2d4   :  { %v72_v36 = vpop.xlane.xlu2 %71 }
 0x2d5   :  { %1355 = vrcp.f32 %v72_v36 }
 0x2db   :  { %v1356_v37 = vpop.eup %1355 }
 0x2dc   :  { %v76_v38 = vmul.f32 %v1356_v37, %v1354_v19  ;;  %v268_v37 = vld [vmem:[%s1838_s3 + $0x8] sm:$0xff] }
 0x2de   :  { %109 = vxpose.xlu2.b32.start.end [1/1] (short) (narrow) %v76_v38, 8  ;;  %v267_v38 = vld [vmem:[%s1838_s3] sm:$0xff] }
 0x316   :  { %v173_v41 = vpop.permute.xlu0 %172 }
 0x317   :  { %v1540_v42 = vsel %vm21_vm0, %v1472_v1, %v173_v41  ;;  %v269_v41 = vld [vmem:[%s1838_s3 + $0x10] sm:$0xff] }
 0x318   :  { %1279 = vmatmul.msk.f32.vlgmr.msra.gmra.mxu2 %vm196_vm2, %v1540_v42  ;;  %1281 = vmatmul.msk.f32.vlgmr.msra.gmra.mxu3 %vm196_vm2, %v1540_v42 }
 0x377   :  { %v125_v43 = vpop.trf.xlu2 }
 0x378   :  { %1278 = vmatmul.msk.f32.gmra.mxu1 %vm54_vm1, %v125_v43 }
 0x39b   :  { %v220_v48 = vpop.f32.mrf.mxu2  ;;  %v243_v55 = vpop.f32.mrf.mxu3 }
 0x39c   :  { %v251_v52 = vadd.f32 %v1338_v50, %v220_v48  ;;  %v1589_v2 = vadd.f32 %v1339_v57, %v243_v55 }
 0x39e   :  { %v1569_v53 = vmul.f32 0.25, %v251_v52 }
 0x3f5   :  { %v167_v44 = vpop.f32.mrf.mxu1 }
 0x3f6   :  { %174 = vrot.lane.b32.xlu0 %v167_v44, %s1431_s0 }
 0x3fe   :  { %258 = vrot.lane.b32.xlu0 %v1340_v45, %s1432_s26 }
 0x468   :  { %v175_v46 = vpop.permute.xlu0 %174 }
 0x469   :  { %v1554_v47 = vsel %vm21_vm0, %v1481_v4, %v175_v46 }
 0x46a   :  { %1280 = vmatmul.msk.f32.gmra.mxu2 %vm196_vm2, %v1554_v47  ;;  %1282 = vmatmul.msk.f32.gmra.mxu3 %vm196_vm2, %v1554_v47 }
 0x470   :  { %v259_v49 = vpop.permute.xlu0 %258 }
 0x471   :  { %v1563_v51 = vadd.f32 %v259_v49, %v220_v48 }
 0x473   :  { %402 = vrot.lane.b32.xlu0 %v1563_v51, %s1433_s29  ;;  %276 = vrot.lane.b32.xlu2 %v1563_v51, %s1432_s26 }
 0x47b   :  { %400 = vrot.lane.b32.xlu0 %v1569_v53, %s1434_s30 }
 0x4cd   :  { %v277_v54 = vpop.permute.xlu2 %276 }
 0x4ce   :  { %1283 = vmatpush.xpose.msk.msrb.mxu1 %vm278_vm3, %v277_v54 }
 0x4d1   :  { %1284 = vmatmul.msk.f32.vlgmr.msrb.gmra.mxu1 %vm278_vm3, %v1569_v53 }
 0x4e5   :  { %v403_v56 = vpop.permute.xlu0 %402 }
 0x4e6   :  { %1289 = vmatpush.xpose.msk.msrb.mxu2 %vm278_vm3, %v403_v56 }
 0x4ea   :  { %552 = vmatpush.msra.mxu2 %v270_v39 }
 0x4ec   :  { %553 = vmatpush.msra.mxu2 %v269_v41 }
 0x4ed   :  { %v223_v58 = vpop.f32.mrf.mxu2  ;;  %v246_v59 = vpop.f32.mrf.mxu3 }
 0x4ee   :  { %v1580_v60 = vadd.f32 %v259_v49, %v223_v58  ;;  %v1582_v61 = vadd.f32 %v1339_v57, %v246_v59  ;;  %v401_v62 = vpop.permute.xlu0 %400  ;;  %v252_v1 = vadd.f32 %v1338_v50, %v223_v58 }
 0x4ef   :  { %1290 = vmatmul.msk.f32.vlgmr.msrb.gmra.mxu2 %vm278_vm3, %v401_v62 }
 0x4f0   :  { %395 = vmatpush.msrb.mxu0 %v1582_v61  ;;  %305 = vrot.lane.b32.xlu0 %v1580_v60, %s1432_s26  ;;  %v1592_v4 = vmul.f32 0.25, %v252_v1 }
 0x54e   :  { %v301_v63 = vpop.f32.mrf.mxu1 }
 0x54f   :  { %v332_v0 = vsel %vm54_vm1, %v301_v63, -inf }
 0x550   :  { %333 = vmax.xlane.f32.xlu0 %v332_v0 }
 0x562   :  { %v306_v3 = vpop.permute.xlu0 %305 }
 0x563   :  { %1285 = vmatpush.xpose.msk.msra.mxu1 %vm278_vm3, %v306_v3 }
 0x564   :  { %430 = vrot.lane.b32.xlu0 %v1580_v60, %s1433_s29  ;;  %s1440_s29 = smov [#allocation2]  }
 0x566   :  { %1286 = vmatmul.msk.f32.vlgmr.msra.gmra.mxu1 %vm278_vm3, %v1592_v4 }
 0x567   :  { %372 = vmatpush.msrb.mxu1 %v1589_v2 }
 0x56c   :  { %479 = vrot.lane.b32.xlu0 %v1589_v2, %s1434_s30 }
 0x572   :  { %v425_v5 = vpop.f32.mrf.mxu2 }
 0x573   :  { %v456_v6 = vsel %vm54_vm1, %v425_v5, -inf }
 0x574   :  { %457 = vmax.xlane.f32.xlu1 %v456_v6  ;;  %592 = vrot.lane.b32.xlu0 %v1563_v51, %s1431_s0 }
 0x58d   :  { %428 = vrot.lane.b32.xlu1 %v1592_v4, %s1434_s30 }
 0x5c3   :  { %v334_v7 = vpop.xlane.xlu0 %333 }
 0x5c4   :  { %v338_v8 = vsub.f32 %v301_v63, %v334_v7 }
 0x5c6   :  { %v340_v9 = vmul.f32 1.442695, %v338_v8 }
 0x5c8   :  { %1357 = vpow2.f32 %v340_v9 }
 0x5ce   :  { %v1358_v10 = vpop.eup %1357 }
 0x5cf   :  { %v344_v11 = vsel %vm54_vm1, %v1358_v10, 0.0 }
 0x5d0   :  { %345 = vadd.xlane.f32.xlu1 %v344_v11  ;;  %v272_v11 = vld [vmem:[%s1838_s3 + $0x28] sm:$0xff] }
 0x5d1   :  { %740 = vmatpush.msrb.mxu2 %v272_v11 }
 0x5d6   :  { %v431_v12 = vpop.permute.xlu0 %430 }
 0x5d7   :  { %1291 = vmatpush.xpose.msk.msrb.mxu3 %vm278_vm3, %v431_v12 }
 0x5db   :  { %581 = vmatpush.msra.mxu3 %v268_v37 }
 0x5dd   :  { %582 = vmatpush.msra.mxu3 %v267_v38 }
 0x5de   :  { %v480_v13 = vpop.permute.xlu0 %479 }
 0x5df   :  { %500 = vmatpush.msra.mxu1 %v480_v13 }
 0x5e3   :  { %v329_v14 = vpop.f32.mrf.mxu1 }
 0x5e4   :  { %v335_v15 = vsel %vm54_vm1, %v329_v14, -inf }
 0x5e5   :  { %336 = vmax.xlane.f32.xlu0 %v335_v15 }
 0x5e6   :  { %v593_v25 = vpop.permute.xlu0 %592 }
 0x5e7   :  { %v458_v16 = vpop.xlane.xlu1 %457 }
 0x5e8   :  { %v462_v17 = vsub.f32 %v425_v5, %v458_v16 }
 0x5ea   :  { %v464_v18 = vmul.f32 1.442695, %v462_v17 }
 0x5ec   :  { %1359 = vpow2.f32 %v464_v18 }
 0x5f2   :  { %v1360_v19 = vpop.eup %1359 }
 0x5f3   :  { %v468_v20 = vsel %vm54_vm1, %v1360_v19, 0.0 }
 0x5f4   :  { %469 = vadd.xlane.f32.xlu1 %v468_v20 }
 0x5f9   :  { %620 = vrot.lane.b32.xlu0 %v1580_v60, %s1431_s0 }
 0x5ff   :  { %v429_v21 = vpop.permute.xlu1 %428 }
 0x600   :  { %1292 = vmatmul.msk.f32.vlgmr.msrb.gmra.mxu3 %vm278_vm3, %v429_v21  ;;  %v271_v21 = vld [vmem:[%s1838_s3 + $0x20] sm:$0xff] }
 0x601   :  { %741 = vmatpush.msrb.mxu2 %v271_v21 }
 0x60d   :  { %590 = vrot.lane.b32.xlu1 %v1569_v53, %s1435_s7 }
 0x643   :  { %v346_v22 = vpop.xlane.xlu1 %345 }
 0x644   :  { %1361 = vrcp.f32 %v346_v22 }
 0x64a   :  { %v1362_v23 = vpop.eup %1361 }
 0x64b   :  { %v352_v24 = vmul.f32 %v1362_v23, %v1358_v10 }
 0x64d   :  { %1287 = vmatmul.msk.f32.vlgmr.msrb.gmra.mxu1 %vm54_vm1, %v352_v24 }
 0x64e   :  { %1299 = vmatpush.xpose.msk.msrb.mxu1 %vm278_vm3, %v593_v25 }
 0x658   :  { %v337_v26 = vpop.xlane.xlu0 %336 }
 0x659   :  { %v339_v27 = vsub.f32 %v329_v14, %v337_v26 }
 0x65b   :  { %v342_v28 = vmul.f32 1.442695, %v339_v27 }
 0x65d   :  { %1363 = vpow2.f32 %v342_v28 }
 0x663   :  { %v1364_v29 = vpop.eup %1363 }
 0x664   :  { %v347_v30 = vsel %vm54_vm1, %v1364_v29, 0.0 }
 0x665   :  { %348 = vadd.xlane.f32.xlu2 %v347_v30 }
 0x667   :  { %v470_v31 = vpop.xlane.xlu1 %469 }
 0x668   :  { %1365 = vrcp.f32 %v470_v31 }
 0x66b   :  { %v621_v58 = vpop.permute.xlu0 %620 }
 0x66e   :  { %v1366_v32 = vpop.eup %1365 }
 0x66f   :  { %v476_v33 = vmul.f32 %v1366_v32, %v1360_v19 }
 0x671   :  { %1293 = vmatmul.msk.f32.vlgmr.msra.gmra.mxu1 %vm54_vm1, %v476_v33 }
 0x67f   :  { %v591_v34 = vpop.permute.xlu1 %590 }
 0x680   :  { %1300 = vmatmul.msk.f32.vlgmr.msrb.gmra.mxu1 %vm278_vm3, %v591_v34 }
 0x683   :  { %v453_v35 = vpop.f32.mrf.mxu3 }
 0x684   :  { %v459_v36 = vsel %vm54_vm1, %v453_v35, -inf }
 0x685   :  { %460 = vmax.xlane.f32.xlu1 %v459_v36 }
 0x69e   :  { %506 = vrot.lane.b32.xlu1 %v1582_v61, %s1434_s30  ;;  %s1263_s30 = sshll.u32 %s1440_s29, 4  ;;  %s1264_s30 = int_to_ptr.vmem [resolvable:$true] %s1263_s30 }
 0x6a6   :  { %668 = vrot.lane.b32.xlu1 %v1589_v2, %s1435_s7 }
 0x6ae   :  { %779 = vrot.lane.b32.xlu1 %v1592_v4, %s1436_s11 }
 0x6ca   :  { %v374_v40 = vpop.f32.mrf.mxu1 }
 0x6cb   :  { %1297 = vmatmul.msk.f32.vlgmr.msra.gmra.mxu3 %vm278_vm3, %v374_v40 }
 0x6d8   :  { %v349_v43 = vpop.xlane.xlu2 %348 }
 0x6d9   :  { %1367 = vrcp.f32 %v349_v43 }
 0x6df   :  { %v1368_v44 = vpop.eup %1367 }
 0x6e0   :  { %v353_v45 = vmul.f32 %v1368_v44, %v1364_v29 }
 0x6e2   :  { %1288 = vmatmul.msk.f32.vlgmr.msrb.gmra.mxu0 %vm54_vm1, %v353_v45 }
 0x6ee   :  { %v502_v46 = vpop.f32.mrf.mxu1 }
 0x6ef   :  { %1295 = vmatmul.msk.f32.vlgmr.msra.gmra.mxu2 %vm278_vm3, %v502_v46 }
 0x6f8   :  { %v461_v48 = vpop.xlane.xlu1 %460 }
 0x6f9   :  { %v463_v49 = vsub.f32 %v453_v35, %v461_v48  ;;  %v1333_v35 = vpack.i.bf16 %v1582_v61, %v1589_v2 }
 0x6fb   :  { %v466_v50 = vmul.f32 1.442695, %v463_v49 }
 0x6fd   :  { %1369 = vpow2.f32 %v466_v50  ;;  %v615_v52 = vpop.f32.mrf.mxu1 }
 0x6fe   :  { %v646_v54 = vsel %vm54_vm1, %v615_v52, -inf }
 0x6ff   :  { %647 = vmax.xlane.f32.xlu2 %v646_v54  ;;  %v273_v54 = vld [vmem:[%s1838_s3 + $0x30] sm:$0xff] }
 0x703   :  { %v1370_v55 = vpop.eup %1369 }
 0x704   :  { %v471_v56 = vsel %vm54_vm1, %v1370_v55, 0.0 }
 0x705   :  { %472 = vadd.xlane.f32.xlu0 %v471_v56 }
 0x710   :  { %v507_v57 = vpop.permute.xlu1 %506 }
 0x711   :  { %527 = vmatpush.msra.mxu0 %v507_v57 }
 0x713   :  { %1301 = vmatpush.xpose.msk.msrb.mxu0 %vm278_vm3, %v621_v58 }
 0x717   :  { %753 = vrot.lane.b32.xlu2 %v1563_v51, %s1437_s16 }
 0x718   :  { %v669_v59 = vpop.permute.xlu1 %668 }
 0x719   :  { %689 = vmatpush.msra.mxu1 %v669_v59  ;;  %618 = vrot.lane.b32.xlu0 %v1592_v4, %s1435_s7 }
 0x720   :  { %v780_v15 = vpop.permute.xlu1 %779 }
 0x721   :  { %751 = vrot.lane.b32.xlu0 %v1569_v53, %s1436_s11 }
 0x75f   :  { %v397_v62 = vpop.f32.mrf.mxu0 }
 0x760   :  { %1298 = vmatmul.msk.f32.gmra.mxu3 %vm278_vm3, %v397_v62 }
 0x772   :  { %v648_v63 = vpop.xlane.xlu2 %647  ;;  %v555_v62 = vpop.f32.mrf.mxu2 }
 0x773   :  { %v652_v0 = vsub.f32 %v615_v52, %v648_v63  ;;  %v274_v52 = vld [vmem:[%s1838_s3 + $0x38] sm:$0xff] }
 0x775   :  { %v654_v1 = vmul.f32 1.442695, %v652_v0 }
 0x777   :  { %1371 = vpow2.f32 %v654_v1 }
 0x778   :  { %v473_v3 = vpop.xlane.xlu0 %472 }
 0x779   :  { %1373 = vrcp.f32 %v473_v3 }
 0x77a   :  { %v754_v5 = vpop.permute.xlu2 %753 }
 0x77b   :  { %1307 = vmatpush.xpose.msk.msrb.mxu3 %vm278_vm3, %v754_v5 }
 0x77d   :  { %v1372_v51 = vpop.eup %1371 }
 0x77e   :  { %v658_v6 = vsel %vm54_vm1, %v1372_v51, 0.0 }
 0x77f   :  { %v1374_v7 = vpop.eup %1373  ;;  %659 = vadd.xlane.f32.xlu2 %v658_v6 }
 0x780   :  { %v477_v4 = vmul.f32 %v1374_v7, %v1370_v55 }
 0x782   :  { %1294 = vmatmul.msk.f32.vlgmr.msra.gmra.mxu0 %vm54_vm1, %v477_v4 }
 0x78b   :  { %v619_v53 = vpop.permute.xlu0 %618 }
 0x78c   :  { %1302 = vmatmul.msk.f32.vlgmr.msrb.gmra.mxu0 %vm278_vm3, %v619_v53 }
 0x793   :  { %v752_v8 = vpop.permute.xlu0 %751 }
 0x794   :  { %1308 = vmatmul.msk.f32.vlgmr.msrb.gmra.mxu3 %vm278_vm3, %v752_v8 }
 0x797   :  { %781 = vrot.lane.b32.xlu2 %v1580_v60, %s1437_s16  ;;  %v1664_v60 = vpop.f32.mrf.mxu3 }
 0x798   :  { %v585_v3 = vadd.f32 %v1664_v60, %v555_v62 }
 0x7e3   :  { %v1667_v18 = vpop.f32.mrf.mxu3 }
 0x7f2   :  { %v660_v9 = vpop.xlane.xlu2 %659 }
 0x7f3   :  { %1375 = vrcp.f32 %v660_v9  ;;  %v1438_v9 = vmov 64.0  }
 0x7f9   :  { %v1376_v10 = vpop.eup %1375 }
 0x7fa   :  { %v666_v12 = vmul.f32 %v1376_v10, %v1372_v51  ;;  %v782_v13 = vpop.permute.xlu2 %781  ;;  %v1341_v51 = vld [vmem:[%s1838_s3 + $0x103] ss:$0 sm:$0xff] }
 0x7fb   :  { %1309 = vmatpush.xpose.msk.msrb.mxu1 %vm278_vm3, %v782_v13 }
 0x7fc   :  { %1303 = vmatmul.msk.f32.vlgmr.msra.gmra.mxu1 %vm54_vm1, %v666_v12 }
 0x7ff   :  { %v529_v14 = vpop.f32.mrf.mxu0  ;;  %901 = vmatpush.msra.mxu1 %v274_v52  ;;  %v1343_v52 = vld [vmem:[%s1838_s3 + $0x107] ss:$0 sm:$0xff] }
 0x800   :  { %1296 = vmatmul.msk.f32.gmra.mxu2 %vm278_vm3, %v529_v14 }
 0x801   :  { %902 = vmatpush.msra.mxu1 %v273_v54 }
 0x804   :  { %1310 = vmatmul.msk.f32.vlgmr.msrb.gmra.mxu1 %vm278_vm3, %v780_v15 }
 0x809   :  { %v643_v16 = vpop.f32.mrf.mxu0 }
 0x80a   :  { %v649_v17 = vsel %vm54_vm1, %v643_v16, -inf }
 0x80b   :  { %650 = vmax.xlane.f32.xlu0 %v649_v17 }
 0x817   :  { %v776_v19 = vpop.f32.mrf.mxu3 }
 0x818   :  { %v807_v20 = vsel %vm54_vm1, %v776_v19, -inf }
 0x819   :  { %808 = vmax.xlane.f32.xlu2 %v807_v20 }
 0x879   :  { %v691_v22 = vpop.f32.mrf.mxu1 }
 0x87a   :  { %1305 = vmatmul.msk.f32.vlgmr.msrb.gmra.mxu2 %vm278_vm3, %v691_v22 }
 0x87e   :  { %v651_v23 = vpop.xlane.xlu0 %650 }
 0x87f   :  { %v653_v24 = vsub.f32 %v643_v16, %v651_v23 }
 0x881   :  { %v656_v25 = vmul.f32 1.442695, %v653_v24  ;;  %v804_v26 = vpop.f32.mrf.mxu1 }
 0x882   :  { %v810_v27 = vsel %vm54_vm1, %v804_v26, -inf }
 0x883   :  { %1377 = vpow2.f32 %v656_v25  ;;  %811 = vmax.xlane.f32.xlu1 %v810_v27  ;;  %v558_v0 = vpop.f32.mrf.mxu2  ;;  %v984_v27 = vld [vmem:[%s1838_s3 + $0x78] sm:$0xff] }
 0x884   :  { %v588_v13 = vadd.f32 %v1667_v18, %v558_v0  ;;  %1001 = vmatpush.msra.mxu2 %v984_v27  ;;  %v1105_v27 = vld [vmem:[%s1838_s3 + $0x88] sm:$0xff] }
 0x889   :  { %v1378_v28 = vpop.eup %1377 }
 0x88a   :  { %v661_v29 = vsel %vm54_vm1, %v1378_v28, 0.0 }
 0x88b   :  { %662 = vadd.xlane.f32.xlu0 %v661_v29 }
 0x88c   :  { %v809_v30 = vpop.xlane.xlu2 %808 }
 0x88d   :  { %v813_v31 = vsub.f32 %v776_v19, %v809_v30  ;;  %v981_v30 = vld [vmem:[%s1838_s3 + $0x60] sm:$0xff] }
 0x88f   :  { %v815_v32 = vmul.f32 1.442695, %v813_v31 }
 0x891   :  { %1379 = vpow2.f32 %v815_v32  ;;  %v980_v32 = vld [vmem:[%s1838_s3 + $0x58] sm:$0xff] }
 0x897   :  { %v1380_v33 = vpop.eup %1379 }
 0x898   :  { %v819_v34 = vsel %vm54_vm1, %v1380_v33, 0.0 }
 0x899   :  { %820 = vadd.xlane.f32.xlu2 %v819_v34  ;;  %v979_v34 = vld [vmem:[%s1838_s3 + $0x50] sm:$0xff] }
 0x89c   :  { %694 = vrot.lane.b32.xlu1 %v1582_v61, %s1435_s7  ;;  %s1265_s7 = sshll.u32 %s1839_s4, 4  ;;  %s1266_s7 = int_to_ptr.hbm [resolvable:$true] %s1265_s7 }
 0x8b1   :  { %1334 = vrot.lane.b32.xlu2 %v1333_v35, %s1436_s11 }
 0x8f6   :  { %v812_v36 = vpop.xlane.xlu1 %811 }
 0x8f7   :  { %v814_v37 = vsub.f32 %v804_v26, %v812_v36  ;;  %v978_v36 = vld [vmem:[%s1838_s3 + $0x48] sm:$0xff] }
 0x8f9   :  { %v817_v38 = vmul.f32 1.442695, %v814_v37  ;;  %v977_v37 = vld [vmem:[%s1838_s3 + $0x40] sm:$0xff] }
 0x8fb   :  { %1381 = vpow2.f32 %v817_v38 }
 0x8fd   :  { %v743_v1 = vpop.f32.mrf.mxu2 }
 0x8fe   :  { %v663_v40 = vpop.xlane.xlu0 %662  ;;  %v749_v5 = vadd.f32 %v743_v1, %v585_v3 }
 0x8ff   :  { %1383 = vrcp.f32 %v663_v40 }
 0x901   :  { %v1382_v39 = vpop.eup %1381 }
 0x902   :  { %v822_v41 = vsel %vm54_vm1, %v1382_v39, 0.0 }
 0x903   :  { %823 = vadd.xlane.f32.xlu0 %v822_v41 }
 0x905   :  { %v1384_v43 = vpop.eup %1383 }
 0x906   :  { %v667_v45 = vmul.f32 %v1384_v43, %v1378_v28  ;;  %v982_v28 = vld [vmem:[%s1838_s3 + $0x68] sm:$0xff] }
 0x90c   :  { %v821_v44 = vpop.xlane.xlu2 %820 }
 0x90d   :  { %1385 = vrcp.f32 %v821_v44 }
 0x90e   :  { %v695_v46 = vpop.permute.xlu1 %694 }
 0x90f   :  { %715 = vmatpush.msra.mxu0 %v695_v46 }
 0x910   :  { %1304 = vmatmul.msk.f32.vlgmr.msra.gmra.mxu0 %vm54_vm1, %v667_v45 }
 0x913   :  { %v1386_v61 = vpop.eup %1385 }
 0x914   :  { %v1335_v2 = vpop.permute.xlu2 %1334  ;;  %v827_v50 = vmul.f32 %v1386_v61, %v1380_v33 }
 0x915   :  { %v1337_v48 = vunpack.i.h.bf16 %v1335_v2  ;;  %v1336_v49 = vunpack.i.l.bf16 %v1335_v2 }
 0x917   :  { %850 = vmatpush.msrb.mxu0 %v1336_v49  ;;  %876 = vmatpush.msra.mxu3 %v1337_v48  ;;  %v1342_v48 = vld [vmem:[%s1838_s3 + $0x106] ss:$0 sm:$0xff] }
 0x918   :  { %1311 = vmatmul.msk.f32.vlgmr.msrb.gmra.mxu0 %vm54_vm1, %v827_v50 }
 0x976   :  { %v824_v55 = vpop.xlane.xlu0 %823 }
 0x977   :  { %1387 = vrcp.f32 %v824_v55 }
 0x978   :  { %1389 = vrcp.f32 %v1438_v9 }
 0x97d   :  { %v1388_v56 = vpop.eup %1387 }
 0x97e   :  { %v828_v57 = vmul.f32 %v1388_v56, %v1382_v39  ;;  %v1390_v10 = vpop.eup %1389 }
 0x97f   :  { %v927_v11 = vmul.f32 64.0, %v1390_v10  ;;  %vm931_vm4 = vweird.f32 %v1390_v10 }
 0x980   :  { %1312 = vmatmul.msk.f32.vlgmr.msra.gmra.mxu3 %vm54_vm1, %v828_v57 }
 0x981   :  { %v928_v15 = vsub.f32 1.0, %v927_v11 }
 0x983   :  { %v929_v19 = vmul.f32 %v1390_v10, %v928_v15  ;;  %v1110_v15 = vld [vmem:[%s1838_s3 + $0xb0] sm:$0xff] }
 0x985   :  { %v930_v21 = vadd.f32 %v1390_v10, %v929_v19 }
 0x987   :  { %v1704_v22 = vsel %vm931_vm4, %v1390_v10, %v930_v21 }
 0x98d   :  { %v717_v58 = vpop.f32.mrf.mxu0 }
 0x98e   :  { %1306 = vmatmul.msk.f32.gmra.mxu2 %vm278_vm3, %v717_v58 }
 0x995   :  { %v852_v59 = vpop.f32.mrf.mxu0 }
 0x996   :  { %1313 = vmatmul.msk.f32.vlgmr.msra.gmra.mxu1 %vm278_vm3, %v852_v59 }
 0xa03   :  { %v878_v63 = vpop.f32.mrf.mxu3 }
 0xa04   :  { %1314 = vmatmul.msk.f32.gmra.mxu1 %vm278_vm3, %v878_v63 }
 0xa11   :  { %v746_v12 = vpop.f32.mrf.mxu2 }
 0xa12   :  { %v750_v14 = vadd.f32 %v746_v12, %v588_v13  ;;  %v1111_v12 = vld [vmem:[%s1838_s3 + $0xb8] sm:$0xff] }
 0xa13   :  { %v904_v6 = vpop.f32.mrf.mxu1  ;;  %1128 = vmatpush.msra.mxu0 %v1111_v12 }
 0xa14   :  { %v910_v7 = vadd.f32 %v904_v6, %v749_v5 }
 0xa15   :  { %1129 = vmatpush.msra.mxu0 %v1110_v15 }
 0xa16   :  { %v914_v4 = vadd.f32 %v1341_v51, %v910_v7 }
 0xa18   :  { %v916_v53 = vadd.f32 %v914_v4, %v1540_v42  ;;  %v1753_v4 = vld [vmem:[%s1838_s3 + $0x104] ss:$0 sm:$0xff] }
 0xa1a   :  { %v920_v8 = vsel %vm196_vm2, %v916_v53, 0.0 }
 0xa1b   :  { %921 = vadd.xlane.f32.xlu0 %v920_v8 }
 0xa81   :  { %v907_v60 = vpop.f32.mrf.mxu1 }
 0xa82   :  { %v911_v16 = vadd.f32 %v907_v60, %v750_v14 }
 0xa84   :  { %v915_v17 = vadd.f32 %v1341_v51, %v911_v16 }
 0xa86   :  { %v917_v20 = vadd.f32 %v915_v17, %v1554_v47  ;;  %v983_v47 = vld [vmem:[%s1838_s3 + $0x70] sm:$0xff]  ;;  %v1109_v17 = vld [vmem:[%s1838_s3 + $0xa8] sm:$0xff] }
 0xa87   :  { %1002 = vmatpush.msra.mxu2 %v983_v47  ;;  %1130 = vmatpush.msra.mxu0 %v1109_v17 }
 0xa88   :  { %v923_v42 = vsel %vm196_vm2, %v917_v20, 0.0 }
 0xa89   :  { %924 = vadd.xlane.f32.xlu0 %v923_v42  ;;  %1003 = vmatpush.msra.mxu2 %v982_v28  ;;  %v1108_v42 = vld [vmem:[%s1838_s3 + $0xa0] sm:$0xff] }
 0xa8a   :  { %1131 = vmatpush.msra.mxu0 %v1108_v42  ;;  %v1104_v28 = vld [vmem:[%s1838_s3 + $0x80] sm:$0xff] }
 0xa8b   :  { %1004 = vmatpush.msra.mxu2 %v981_v30 }
 0xa8d   :  { %1005 = vmatpush.msra.mxu2 %v980_v32 }
 0xa8e   :  { %v922_v23 = vpop.xlane.xlu0 %921 }
 0xa8f   :  { %v933_v24 = vmul.f32 %v1704_v22, %v922_v23  ;;  %1006 = vmatpush.msra.mxu2 %v979_v34  ;;  %v1107_v23 = vld [vmem:[%s1838_s3 + $0x98] sm:$0xff] }
 0xa90   :  { %1132 = vmatpush.msra.mxu0 %v1107_v23 }
 0xa91   :  { %v935_v25 = vsub.f32 %v916_v53, %v933_v24  ;;  %1007 = vmatpush.msra.mxu2 %v978_v36 }
 0xa93   :  { %v937_v18 = vmul.f32 %v935_v25, %v935_v25  ;;  %1008 = vmatpush.msra.mxu2 %v977_v37 }
 0xa95   :  { %v939_v26 = vsel %vm196_vm2, %v937_v18, 0.0  ;;  %v1106_v18 = vld [vmem:[%s1838_s3 + $0x90] sm:$0xff] }
 0xa96   :  { %940 = vadd.xlane.f32.xlu1 %v939_v26  ;;  %1133 = vmatpush.msra.mxu0 %v1106_v18 }
 0xa98   :  { %1134 = vmatpush.msra.mxu0 %v1105_v27 }
 0xa9a   :  { %1135 = vmatpush.msra.mxu0 %v1104_v28 }
 0xafc   :  { %v925_v29 = vpop.xlane.xlu0 %924 }
 0xafd   :  { %v934_v31 = vmul.f32 %v1704_v22, %v925_v29 }
 0xaff   :  { %v936_v33 = vsub.f32 %v917_v20, %v934_v31 }
 0xb01   :  { %v938_v35 = vmul.f32 %v936_v33, %v936_v33 }
 0xb03   :  { %v942_v38 = vsel %vm196_vm2, %v938_v35, 0.0 }
 0xb04   :  { %943 = vadd.xlane.f32.xlu0 %v942_v38 }
 0xb09   :  { %v941_v39 = vpop.xlane.xlu1 %940 }
 0xb0a   :  { %v945_v40 = vmul.f32 %v941_v39, %v1704_v22 }
 0xb0c   :  { %v947_v41 = vadd.f32 1e-05, %v945_v40 }
 0xb0e   :  { %1391 = vrsqrt.f32 %v947_v41  ;;  %vm955_vm6 = vweird.f32 %v947_v41 }
 0xb14   :  { %v1392_v43 = vpop.eup %1391 }
 0xb15   :  { %v950_v44 = vmul.f32 %v1392_v43, %v947_v41  ;;  %vm956_vm5 = vweird.f32 %v1392_v43 }
 0xb16   :  { %vm957_vm7 = vmor %vm955_vm6, %vm956_vm5 }
 0xb17   :  { %v951_v45 = vmul.f32 %v1392_v43, %v950_v44 }
 0xb19   :  { %v952_v46 = vmul.f32 0.5, %v951_v45 }
 0xb1b   :  { %v953_v61 = vsub.f32 1.5, %v952_v46 }
 0xb1d   :  { %v954_v2 = vmul.f32 %v1392_v43, %v953_v61 }
 0xb1f   :  { %v958_v49 = vsel %vm957_vm7, %v1392_v43, %v954_v2 }
 0xb20   :  { %v969_v50 = vmul.f32 %v958_v49, %v935_v25 }
 0xb22   :  { %v972_v54 = vmul.f32 %v1342_v48, %v969_v50 }
 0xb24   :  { %v1741_v55 = vadd.f32 %v1343_v52, %v972_v54 }
 0xb26   :  { %1315 = vmatmul.msk.f32.vlgmr.msra.gmra.mxu2 %vm196_vm2, %v1741_v55 }
 0xb77   :  { %v944_v56 = vpop.xlane.xlu0 %943 }
 0xb78   :  { %v946_v57 = vmul.f32 %v944_v56, %v1704_v22 }
 0xb7a   :  { %v948_v58 = vadd.f32 1e-05, %v946_v57 }
 0xb7c   :  { %1393 = vrsqrt.f32 %v948_v58  ;;  %vm965_vm9 = vweird.f32 %v948_v58 }
 0xb82   :  { %v1394_v59 = vpop.eup %1393 }
 0xb83   :  { %v960_v62 = vmul.f32 %v1394_v59, %v948_v58  ;;  %vm966_vm8 = vweird.f32 %v1394_v59 }
 0xb84   :  { %vm967_vm10 = vmor %vm965_vm9, %vm966_vm8 }
 0xb85   :  { %v961_v63 = vmul.f32 %v1394_v59, %v960_v62 }
 0xb87   :  { %v962_v0 = vmul.f32 0.5, %v961_v63 }
 0xb89   :  { %v963_v1 = vsub.f32 1.5, %v962_v0 }
 0xb8b   :  { %v964_v3 = vmul.f32 %v1394_v59, %v963_v1 }
 0xb8d   :  { %v968_v5 = vsel %vm967_vm10, %v1394_v59, %v964_v3 }
 0xb8e   :  { %v970_v51 = vmul.f32 %v968_v5, %v936_v33 }
 0xb90   :  { %v973_v6 = vmul.f32 %v1342_v48, %v970_v51 }
 0xb92   :  { %v1746_v7 = vadd.f32 %v1343_v52, %v973_v6 }
 0xb94   :  { %1316 = vmatmul.msk.f32.gmra.mxu2 %vm196_vm2, %v1746_v7 }
 0xba9   :  { %v1010_v53 = vpop.f32.mrf.mxu2 }
 0xbaa   :  { %v1011_v8 = vadd.f32 %v1753_v4, %v1010_v53 }
 0xbac   :  { %v1018_v9 = vmul.f32 0.70710677, %v1011_v8  ;;  %v1016_v52 = vmul.f32 0.5, %v1011_v8 }
 0xbae   :  { %v1020_v10 = vmul.f32 %v1018_v9, %v1018_v9 }
 0xbb0   :  { %v1021_v11 = vmin.f32 %v1020_v10, 16.0 }
 0xbb2   :  { %v1022_v13 = vmul.f32 2.1237322e-06, %v1021_v11  ;;  %v1033_v14 = vmul.f32 3.8918573e-05, %v1021_v11 }
 0xbb4   :  { %v1023_v60 = vadd.f32 0.00028619796, %v1022_v13  ;;  %v1034_v16 = vadd.f32 0.001143296, %v1033_v14 }
 0xbb6   :  { %v1024_v19 = vmul.f32 %v1023_v60, %v1021_v11  ;;  %v1035_v20 = vmul.f32 %v1034_v16, %v1021_v11 }
 0xbb8   :  { %v1036_v21 = vadd.f32 0.014752088, %v1035_v20  ;;  %v1025_v24 = vadd.f32 0.0036580483, %v1024_v19 }
 0xbba   :  { %v1037_v25 = vmul.f32 %v1036_v21, %v1021_v11  ;;  %v1026_v47 = vmul.f32 %v1025_v24, %v1021_v11 }
 0xbbc   :  { %v1038_v26 = vadd.f32 0.112945676, %v1037_v25  ;;  %v1027_v31 = vadd.f32 0.05243302, %v1026_v47 }
 0xbbe   :  { %v1039_v29 = vmul.f32 %v1038_v26, %v1021_v11  ;;  %v1028_v34 = vmul.f32 %v1027_v31, %v1021_v11 }
 0xbc0   :  { %v1040_v30 = vadd.f32 0.4994258, %v1039_v29  ;;  %v1029_v35 = vadd.f32 0.18741608, %v1028_v34  ;;  %v1345_v34 = vld [vmem:[%s1838_s3 + $0x105] ss:$0 sm:$0xff] }
 0xbc2   :  { %v1041_v32 = vmul.f32 %v1040_v30, %v1021_v11  ;;  %v1030_v37 = vmul.f32 %v1029_v35, %v1021_v11 }
 0xbc4   :  { %v1042_v33 = vadd.f32 1.0, %v1041_v32  ;;  %v1031_v41 = vadd.f32 1.1283791, %v1030_v37 }
 0xbc6   :  { %1395 = vrcp.f32 %v1042_v33  ;;  %v1054_v40 = vand.u32 2147483648, %v1042_v33  ;;  %v1052_v44 = vand.u32 2147483647, %v1042_v33  ;;  %vm1048_vm12 = vweird.f32 %v1042_v33 }
 0xbc7   :  { %v1032_v61 = vmul.f32 %v1031_v41, %v1018_v9 }
 0xbc8   :  { %v1055_v46 = vor.u32 1.1754944e-38, %v1054_v40  ;;  %vm1053_vm14 = vcmp.eq.f32.partialorder %v1052_v44, 8.507059e+37 }
 0xbcc   :  { %v1396_v36 = vpop.eup %1395 }
 0xbcd   :  { %v1044_v38 = vmul.f32 %v1396_v36, %v1042_v33  ;;  %vm1049_vm11 = vweird.f32 %v1396_v36 }
 0xbce   :  { %vm1050_vm13 = vmor %vm1048_vm12, %vm1049_vm11  ;;  %vm1232_vm11 = vcmask 1041409   ;;  %vm1256_vm12 = vcmask 58368  }
 0xbcf   :  { %v1045_v39 = vsub.f32 1.0, %v1044_v38 }
 0xbd1   :  { %v1046_v43 = vmul.f32 %v1396_v36, %v1045_v39 }
 0xbd3   :  { %v1047_v45 = vadd.f32 %v1396_v36, %v1046_v43 }
 0xbd5   :  { %v1051_v2 = vsel %vm1050_vm13, %v1396_v36, %v1047_v45 }
 0xbd6   :  { %v1056_v48 = vsel %vm1053_vm14, %v1055_v46, %v1051_v2 }
 0xbd7   :  { %v1057_v49 = vmul.f32 %v1056_v48, %v1032_v61 }
 0xbd9   :  { %v1317_v50 = vclamps-f32 %v1057_v49, 1.0 }
 0xbdb   :  { %v1100_v54 = vadd.f32 1.0, %v1317_v50 }
 0xbdd   :  { %v1102_v56 = vmul.f32 %v1100_v54, %v1016_v52 }
 0xbdf   :  { %1319 = vmatmul.msk.f32.vlgmr.msra.gmra.mxu0 %vm196_vm2, %v1102_v56 }
 0xc17   :  { %v1013_v57 = vpop.f32.mrf.mxu2 }
 0xc18   :  { %v1014_v58 = vadd.f32 %v1753_v4, %v1013_v57 }
 0xc1a   :  { %v1019_v59 = vmul.f32 0.70710677, %v1014_v58  ;;  %v1017_v31 = vmul.f32 0.5, %v1014_v58 }
 0xc1c   :  { %v1060_v62 = vmul.f32 %v1019_v59, %v1019_v59 }
 0xc1e   :  { %v1061_v63 = vmin.f32 %v1060_v62, 16.0 }
 0xc20   :  { %v1062_v0 = vmul.f32 2.1237322e-06, %v1061_v63  ;;  %v1073_v1 = vmul.f32 3.8918573e-05, %v1061_v63 }
 0xc22   :  { %v1063_v3 = vadd.f32 0.00028619796, %v1062_v0  ;;  %v1074_v5 = vadd.f32 0.001143296, %v1073_v1  ;;  %v1227_v1 = vld [vmem:[%s1838_s3 + $0xf8] sm:$0xff] }
 0xc23   :  { %1244 = vmatpush.msrb.mxu3 %v1227_v1 }
 0xc24   :  { %v1064_v51 = vmul.f32 %v1063_v3, %v1061_v63  ;;  %v1075_v6 = vmul.f32 %v1074_v5, %v1061_v63  ;;  %v1226_v3 = vld [vmem:[%s1838_s3 + $0xf0] sm:$0xff] }
 0xc25   :  { %1245 = vmatpush.msrb.mxu3 %v1226_v3 }
 0xc26   :  { %v1076_v53 = vadd.f32 0.014752088, %v1075_v6  ;;  %v1065_v9 = vadd.f32 0.0036580483, %v1064_v51  ;;  %v1225_v6 = vld [vmem:[%s1838_s3 + $0xe8] sm:$0xff] }
 0xc27   :  { %1246 = vmatpush.msrb.mxu3 %v1225_v6 }
 0xc28   :  { %v1077_v10 = vmul.f32 %v1076_v53, %v1061_v63  ;;  %v1066_v11 = vmul.f32 %v1065_v9, %v1061_v63  ;;  %v1224_v9 = vld [vmem:[%s1838_s3 + $0xe0] sm:$0xff] }
 0xc29   :  { %1247 = vmatpush.msrb.mxu3 %v1224_v9 }
 0xc2a   :  { %v1078_v8 = vadd.f32 0.112945676, %v1077_v10  ;;  %v1067_v14 = vadd.f32 0.05243302, %v1066_v11  ;;  %v1346_v10 = vld [vmem:[%s1838_s3 + $0x108] ss:$0 sm:$0xff] }
 0xc2c   :  { %v1079_v12 = vmul.f32 %v1078_v8, %v1061_v63  ;;  %v1068_v4 = vmul.f32 %v1067_v14, %v1061_v63 }
 0xc2e   :  { %v1080_v13 = vadd.f32 0.4994258, %v1079_v12  ;;  %v1069_v16 = vadd.f32 0.18741608, %v1068_v4  ;;  %v1223_v12 = vld [vmem:[%s1838_s3 + $0xd8] sm:$0xff] }
 0xc2f   :  { %1248 = vmatpush.msrb.mxu3 %v1223_v12 }
 0xc30   :  { %v1081_v15 = vmul.f32 %v1080_v13, %v1061_v63  ;;  %v1070_v19 = vmul.f32 %v1069_v16, %v1061_v63  ;;  %v1347_v13 = vld [vmem:[%s1838_s3 + $0x109] ss:$0 sm:$0xff] }
 0xc32   :  { %v1082_v60 = vadd.f32 1.0, %v1081_v15  ;;  %v1071_v23 = vadd.f32 1.1283791, %v1070_v19  ;;  %v1221_v15 = vld [vmem:[%s1838_s3 + $0xc8] sm:$0xff] }
 0xc34   :  { %1397 = vrcp.f32 %v1082_v60  ;;  %v1094_v21 = vand.u32 2147483648, %v1082_v60  ;;  %v1092_v25 = vand.u32 2147483647, %v1082_v60  ;;  %vm1088_vm0 = vweird.f32 %v1082_v60 }
 0xc35   :  { %v1072_v27 = vmul.f32 %v1071_v23, %v1019_v59 }
 0xc36   :  { %v1095_v26 = vor.u32 1.1754944e-38, %v1094_v21  ;;  %vm1093_vm3 = vcmp.eq.f32.partialorder %v1092_v25, 8.507059e+37 }
 0xc3a   :  { %v1398_v17 = vpop.eup %1397 }
 0xc3b   :  { %v1084_v20 = vmul.f32 %v1398_v17, %v1082_v60  ;;  %vm1089_vm15 = vweird.f32 %v1398_v17  ;;  %v1220_v60 = vld [vmem:[%s1838_s3 + $0xc0] sm:$0xff] }
 0xc3c   :  { %vm1090_vm1 = vmor %vm1088_vm0, %vm1089_vm15 }
 0xc3d   :  { %v1085_v42 = vsub.f32 1.0, %v1084_v20  ;;  %v1439_v20 = vmov 8.0  }
 0xc3f   :  { %v1086_v24 = vmul.f32 %v1398_v17, %v1085_v42 }
 0xc41   :  { %v1087_v18 = vadd.f32 %v1398_v17, %v1086_v24 }
 0xc43   :  { %v1091_v47 = vsel %vm1090_vm1, %v1398_v17, %v1087_v18 }
 0xc44   :  { %v1096_v28 = vsel %vm1093_vm3, %v1095_v26, %v1091_v47 }
 0xc45   :  { %v1097_v29 = vmul.f32 %v1096_v28, %v1072_v27 }
 0xc47   :  { %v1318_v30 = vclamps-f32 %v1097_v29, 1.0 }
 0xc49   :  { %v1101_v32 = vadd.f32 1.0, %v1318_v30 }
 0xc4b   :  { %v1103_v33 = vmul.f32 %v1101_v32, %v1017_v31 }
 0xc4d   :  { %1320 = vmatmul.msk.f32.gmra.mxu0 %vm196_vm2, %v1103_v33 }
 0xc5c   :  { %v1137_v35 = vpop.f32.mrf.mxu0 }
 0xc5d   :  { %v1138_v36 = vadd.f32 %v1345_v34, %v1137_v35 }
 0xc5f   :  { %v1143_v37 = vadd.f32 %v1138_v36, %v1741_v55 }
 0xc61   :  { %v1147_v38 = vsel %vm196_vm2, %v1143_v37, 0.0 }
 0xc62   :  { %1148 = vadd.xlane.f32.xlu2 %v1147_v38 }
 0xcca   :  { %v1140_v39 = vpop.f32.mrf.mxu0 }
 0xccb   :  { %v1141_v40 = vadd.f32 %v1345_v34, %v1140_v39 }
 0xccd   :  { %v1144_v41 = vadd.f32 %v1141_v40, %v1746_v7 }
 0xccf   :  { %v1150_v43 = vsel %vm196_vm2, %v1144_v41, 0.0 }
 0xcd0   :  { %1151 = vadd.xlane.f32.xlu0 %v1150_v43 }
 0xcd5   :  { %v1149_v44 = vpop.xlane.xlu2 %1148 }
 0xcd6   :  { %v1153_v45 = vmul.f32 %v1149_v44, %v1704_v22 }
 0xcd8   :  { %v1155_v46 = vsub.f32 %v1143_v37, %v1153_v45 }
 0xcda   :  { %v1157_v61 = vmul.f32 %v1155_v46, %v1155_v46 }
 0xcdc   :  { %v1159_v2 = vsel %vm196_vm2, %v1157_v61, 0.0 }
 0xcdd   :  { %1160 = vadd.xlane.f32.xlu0 %v1159_v2 }
 0xd43   :  { %v1152_v48 = vpop.xlane.xlu0 %1151 }
 0xd44   :  { %v1154_v55 = vmul.f32 %v1152_v48, %v1704_v22 }
 0xd46   :  { %v1156_v49 = vsub.f32 %v1144_v41, %v1154_v55  ;;  %v1348_v55 = vld [vmem:[%s1838_s3 + $0x10a] ss:$0 sm:$0xff] }
 0xd48   :  { %v1158_v50 = vmul.f32 %v1156_v49, %v1156_v49 }
 0xd4a   :  { %v1162_v52 = vsel %vm196_vm2, %v1158_v50, 0.0 }
 0xd4b   :  { %1163 = vadd.xlane.f32.xlu0 %v1162_v52 }
 0xd50   :  { %v1161_v7 = vpop.xlane.xlu0 %1160 }
 0xd51   :  { %v1165_v54 = vmul.f32 %v1161_v7, %v1704_v22 }
 0xd53   :  { %v1167_v56 = vadd.f32 1e-05, %v1165_v54 }
 0xd55   :  { %1399 = vrsqrt.f32 %v1167_v56  ;;  %vm1175_vm5 = vweird.f32 %v1167_v56 }
 0xd5b   :  { %v1400_v57 = vpop.eup %1399 }
 0xd5c   :  { %v1170_v58 = vmul.f32 %v1400_v57, %v1167_v56  ;;  %vm1176_vm4 = vweird.f32 %v1400_v57 }
 0xd5d   :  { %vm1177_vm6 = vmor %vm1175_vm5, %vm1176_vm4 }
 0xd5e   :  { %v1171_v59 = vmul.f32 %v1400_v57, %v1170_v58 }
 0xd60   :  { %v1172_v62 = vmul.f32 0.5, %v1171_v59 }
 0xd62   :  { %v1173_v63 = vsub.f32 1.5, %v1172_v62 }
 0xd64   :  { %v1174_v0 = vmul.f32 %v1400_v57, %v1173_v63 }
 0xd66   :  { %v1178_v5 = vsel %vm1177_vm6, %v1400_v57, %v1174_v0 }
 0xd67   :  { %v1189_v8 = vmul.f32 %v1178_v5, %v1155_v46 }
 0xd69   :  { %v1192_v14 = vmul.f32 %v1346_v10, %v1189_v8 }
 0xd6b   :  { %v1195_v16 = vadd.f32 %v1347_v13, %v1192_v14 }
 0xd6d   :  { %v1197_v42 = vsel %vm196_vm2, %v1195_v16, 0.0 }
 0xd6e   :  { %v1198_v23 = vrot.slane %v1197_v42, 4 }
 0xd70   :  { %v1199_v27 = vadd.f32 %v1198_v23, %v1197_v42 }
 0xd72   :  { %v1200_v30 = vrot.slane %v1199_v27, 2 }
 0xd74   :  { %v1201_v35 = vadd.f32 %v1200_v30, %v1199_v27 }
 0xd76   :  { %v1202_v38 = vrot.slane %v1201_v35, 1 }
 0xd78   :  { %v1203_v43 = vadd.f32 %v1202_v38, %v1201_v35 }
 0xdbe   :  { %v1164_v51 = vpop.xlane.xlu0 %1163 }
 0xdbf   :  { %v1166_v53 = vmul.f32 %v1164_v51, %v1704_v22  ;;  %v1222_v22 = vld [vmem:[%s1838_s3 + $0xd0] sm:$0xff] }
 0xdc0   :  { %1249 = vmatpush.msrb.mxu3 %v1222_v22 }
 0xdc1   :  { %v1168_v11 = vadd.f32 1e-05, %v1166_v53 }
 0xdc2   :  { %1250 = vmatpush.msrb.mxu3 %v1221_v15 }
 0xdc3   :  { %1401 = vrsqrt.f32 %v1168_v11  ;;  %vm1185_vm8 = vweird.f32 %v1168_v11 }
 0xdc4   :  { %1251 = vmatpush.msrb.mxu3 %v1220_v60  ;;  %1403 = vrcp.f32 %v1439_v20 }
 0xdc9   :  { %v1402_v4 = vpop.eup %1401 }
 0xdca   :  { %v1180_v17 = vmul.f32 %v1402_v4, %v1168_v11  ;;  %vm1186_vm7 = vweird.f32 %v1402_v4  ;;  %v1404_v25 = vpop.eup %1403 }
 0xdcb   :  { %vm1187_vm9 = vmor %vm1185_vm8, %vm1186_vm7  ;;  %v1212_v28 = vmul.f32 8.0, %v1404_v25  ;;  %vm1216_vm10 = vweird.f32 %v1404_v25 }
 0xdcc   :  { %v1181_v19 = vmul.f32 %v1402_v4, %v1180_v17 }
 0xdcd   :  { %v1213_v32 = vsub.f32 1.0, %v1212_v28 }
 0xdce   :  { %v1182_v21 = vmul.f32 0.5, %v1181_v19 }
 0xdcf   :  { %v1214_v36 = vmul.f32 %v1404_v25, %v1213_v32 }
 0xdd0   :  { %v1183_v24 = vsub.f32 1.5, %v1182_v21 }
 0xdd1   :  { %v1215_v40 = vadd.f32 %v1404_v25, %v1214_v36 }
 0xdd2   :  { %v1184_v18 = vmul.f32 %v1402_v4, %v1183_v24 }
 0xdd3   :  { %v1217_v45 = vsel %vm1216_vm10, %v1404_v25, %v1215_v40 }
 0xdd4   :  { %v1188_v26 = vsel %vm1187_vm9, %v1402_v4, %v1184_v18  ;;  %v1218_v61 = vmul.f32 %v1217_v45, %v1203_v43 }
 0xdd5   :  { %v1190_v47 = vmul.f32 %v1188_v26, %v1156_v49 }
 0xdd7   :  { %v1193_v29 = vmul.f32 %v1346_v10, %v1190_v47 }
 0xdd9   :  { %v1196_v31 = vadd.f32 %v1347_v13, %v1193_v29 }
 0xddb   :  { %v1204_v33 = vsel %vm196_vm2, %v1196_v31, 0.0 }
 0xddc   :  { %v1205_v34 = vrot.slane %v1204_v33, 4 }
 0xdde   :  { %v1206_v37 = vadd.f32 %v1205_v34, %v1204_v33 }
 0xde0   :  { %v1207_v39 = vrot.slane %v1206_v37, 2 }
 0xde2   :  { %v1208_v41 = vadd.f32 %v1207_v39, %v1206_v37 }
 0xde4   :  { %v1209_v44 = vrot.slane %v1208_v41, 1 }
 0xde6   :  { %v1210_v46 = vadd.f32 %v1209_v44, %v1208_v41 }
 0xde8   :  { %v1219_v2 = vmul.f32 %v1217_v45, %v1210_v46 }
 0xdea   :  { %v1233_v48 = vsel %vm1232_vm11, %v1219_v2, %v1218_v61 }
 0xdeb   :  { %1321 = vmatmul.msk.f32.vlgmr.msrb.gmra.mxu3 %vm196_vm2, %v1233_v48 }
 0xe6e   :  { %v1253_v49 = vpop.f32.mrf.mxu3 }
 0xe6f   :  { %v1254_v50 = vadd.f32 %v1348_v55, %v1253_v49 }
 0xe71   :  { %1257 = vst.msk [vmem:[#allocation2] sm:$0x3] %vm1256_vm12, %v1254_v50 }
 0xe72   :  { %1268 = dma.vmem_to_hbm [thread:$0]  %s1264_s30, 32, %s1266_s7, [#allocation3]  }
 0xe73   :  { %1429 = dma.done.wait [#allocation3], 32  }
 0xe74   :  { %1430 = vsyncadd [#allocation3], 4294967264 }
 0xe75   :  { %1273 = vsyncpa [#allocation3], 1 }

</bundles_post_ra>
